<compile_context>
chip_gen: v6e
topology: v6e:2x2x1
jax: 0.10.0
libtpu: 0.0.40
codegen_flags: <defaults>
</compile_context>

<pallas_src>
import functools

import jax
import jax.numpy as jnp
import numpy as np
from jax import lax
from jax.experimental import pallas as pl
from jax.experimental.pallas import tpu as pltpu

# ----------------------------- static config --------------------------------
B = 2                      # batch
CIN, H, W = 4, 18, 18      # input_shape (C, H, W)
K0 = 3                     # input_kernel
STRIDE = 1                 # input_stride (row-tap slicing below assumes 1)
CR = 8                     # residual_block_channels
K1 = 3                     # residual_block_kernel
NB = 2                     # num_residual_blocks
OUT_DIM = 32               # output_dim
H1 = (H - K0) // STRIDE + 1    # 16  (valid conv output height)
W1 = (W - K0) // STRIDE + 1    # 16
PAD = (K1 - 1) // 2            # 1   ('same' padding for residual convs)
L = W1 * CR                    # 128 (packed lane axis: lane = j*CR + c)
WIN = W * CIN                  # 72  (packed input row: lane = w*CIN + c)
XL = 128                       # input row padded to a full lane tile
F_FEAT = CR * H1 * W1          # 2048 features into the final linear

assert STRIDE == 1, "kernel row-tap slicing written for stride 1"
assert L == 128 and K1 == 3 and PAD == 1 and WIN <= XL


# ------------------------------- kernel --------------------------------------
def _encoder_kernel(x_ref, w0_ref, b0_ref, wcat_ref, bblk_ref, wf_hbm, bf_ref,
                    o_ref, wf_vmem, flat_ref, wf_sem, *, bb):
    """Fused forward for `bb` batch elements (batch folded into matmul M).

    x_ref   : (bb, H, XL)            input rows, lane = w*CIN + c (zero-padded)
    w0_ref  : (K0*XL, L) bf16        banded + kh-stacked initial-conv weights
    b0_ref  : (1, L) f32             initial bias, tiled per column block
    wcat_ref: (NB, 2, K1*L, L) bf16  banded + kh-stacked residual-conv weights
    bblk_ref: (NB, 2, 1, L) f32      residual biases, tiled per column block
    wf_hbm  : (F_FEAT, OUT_DIM) bf16 final linear weight, HWC-permuted (HBM)
    bf_ref  : (1, OUT_DIM) f32
    o_ref   : (bb, 1, OUT_DIM) f32
    wf_vmem : (F_FEAT, OUT_DIM) bf16 VMEM staging for wf (manual DMA)
    flat_ref: (bb, F_FEAT) f32       lane-dense flatten scratch for the linear
    wf_sem  : DMA semaphore
    """
    M = bb * H1

    # Kick off the epilogue-weight DMA; it hides behind the conv stack.
    wf_cp = pltpu.make_async_copy(wf_hbm, wf_vmem, wf_sem)
    wf_cp.start()

    # ---- initial layer: Conv2d(CIN->CR, K0, stride 1, 'valid') + bias + ReLU
    # The K0 row taps are fused into a single K=3*128 bf16 matmul: shifted row
    # views concatenated along lanes; kw taps + channel mixing are in w0_ref.
    lhs0 = jnp.concatenate(
        [x_ref[:, kh:kh + H1, :].reshape(M, XL) for kh in range(K0)],
        axis=1).astype(jnp.bfloat16)                          # (M, 3*128)
    acc = jnp.dot(lhs0, w0_ref[...], preferred_element_type=jnp.float32)
    h = jnp.maximum(acc + b0_ref[...], 0.0)                   # (M, 128) f32

    # Row-boundary masks: zero rows shifted across the top/bottom of an image
    # (H-direction 'same' padding) and across batch-element boundaries.
    row_in_img = lax.broadcasted_iota(jnp.int32, (M, L), 0) % H1
    first_row = row_in_img == 0
    last_row = row_in_img == H1 - 1
    zrow = jnp.zeros((1, L), jnp.float32)

    def conv_same(hmat, bi, li):
        # Conv2d(CR->CR, 3, padding='same') as ONE K=3*128 bf16 matmul.
        # In-vreg sublane shifts (slice + concat; no VMEM halo round-trip).
        up = jnp.concatenate([zrow, hmat[:M - 1, :]], axis=0)   # row i-1
        dn = jnp.concatenate([hmat[1:, :], zrow], axis=0)       # row i+1
        up = jnp.where(first_row, 0.0, up)
        dn = jnp.where(last_row, 0.0, dn)
        lhs = jnp.concatenate([up, hmat, dn], axis=1).astype(jnp.bfloat16)
        return jnp.dot(lhs, wcat_ref[bi, li],
                       preferred_element_type=jnp.float32) + bblk_ref[bi, li]

    # ---- residual blocks (+ post-block activation, as in the torch forward)
    for bi in range(NB):
        res = h
        t = jnp.maximum(conv_same(h, bi, 0), 0.0)   # activation; dropout p=0 == identity
        t = conv_same(t, bi, 1)
        h = jnp.maximum(res + t, 0.0)               # residual add + ReLU

    # ---- fused final nn.Linear on the HWC-flattened activations ------------
    h3 = h.reshape(bb, H1, L)
    for i in range(H1):                              # lane-tile-aligned writes
        flat_ref[:, i * L:(i + 1) * L] = h3[:, i, :]
    wf_cp.wait()                                     # wf must have landed now
    out = jnp.dot(flat_ref[...].astype(jnp.bfloat16), wf_vmem[...],
                  preferred_element_type=jnp.float32) + bf_ref[...]
    o_ref[...] = out.reshape(bb, 1, OUT_DIM).astype(o_ref.dtype)


# ------------------------------ wrappers --------------------------------------
def _encoder_call(x_pad, p, bb):
    kernel = functools.partial(_encoder_kernel, bb=bb)
    return pl.pallas_call(
        kernel,
        out_shape=jax.ShapeDtypeStruct((B, 1, OUT_DIM), jnp.float32),
        grid_spec=pltpu.PrefetchScalarGridSpec(
            num_scalar_prefetch=0,
            grid=(B // bb,),
            in_specs=[
                pl.BlockSpec((bb, H, XL), lambda n: (n, 0, 0)),
                pl.BlockSpec((K0 * XL, L), lambda n: (0, 0)),
                pl.BlockSpec((1, L), lambda n: (0, 0)),
                pl.BlockSpec((NB, 2, K1 * L, L), lambda n: (0, 0, 0, 0)),
                pl.BlockSpec((NB, 2, 1, L), lambda n: (0, 0, 0, 0)),
                pl.BlockSpec(memory_space=pl.ANY),          # wf stays in HBM
                pl.BlockSpec((1, OUT_DIM), lambda n: (0, 0)),
            ],
            out_specs=pl.BlockSpec((bb, 1, OUT_DIM), lambda n: (n, 0, 0)),
            scratch_shapes=[
                pltpu.VMEM((F_FEAT, OUT_DIM), jnp.bfloat16),   # wf staging
                pltpu.VMEM((bb, F_FEAT), jnp.float32),         # flatten scratch
                pltpu.SemaphoreType.DMA,                       # wf DMA sem
            ],
        ),
        compiler_params=pltpu.CompilerParams(
            dimension_semantics=("parallel",)),
    )(x_pad, p["w0cat"], p["b0p"], p["wcat"], p["bblkp"], p["wf_hwc"], p["bfp"])


def residual_conv2d_encoder(x_flat, params, batch_block=None):
    """x_flat: (B, CIN*H*W) float32 -> (B, OUT_DIM), matching the torch forward."""
    # Fold the whole (small) batch into one grid step: at B=2 the kernel is
    # launch/DMA bound, so splitting across TensorCores would duplicate the
    # weight fetch and halve matmul M.  For larger B use 8 elements per step
    # (M = 128 rows) so MXU rows fill and the weight DMA amortizes.
    if batch_block is None:
        batch_block = B if B <= 8 else 8
    bb = batch_block
    assert B % bb == 0
    x = x_flat.reshape(B, CIN, H, W)                              # torch .view -> NCHW
    x_rows = jnp.transpose(x, (0, 2, 3, 1)).reshape(B, H, WIN)    # lane = w*CIN + c
    x_pad = jnp.pad(x_rows, ((0, 0), (0, 0), (0, XL - WIN)))      # lane-align to 128
    out3 = _encoder_call(x_pad, params, bb)
    return out3[:, 0, :]


# --------------------- offline parameter preparation --------------------------
def prepare_params(w0_oihw, b0, wblk_oihw, bblk, wf, bf):
    """Fold conv taps / layout permutations into MXU-friendly bf16 weights."""
    # initial layer: banded matrix per kh, stacked along K into (3*128, 128).
    w0 = np.asarray(w0_oihw)                                   # (CR, CIN, K0, K0)
    w0cat = np.zeros((K0 * XL, L), np.float32)
    for kh in range(K0):
        for kw in range(K0):
            wt = w0[:, :, kh, kw].T                            # [c_in, o_out]
            for j in range(W1):
                jin = j * STRIDE + kw
                w0cat[kh * XL + jin * CIN: kh * XL + (jin + 1) * CIN,
                      j * CR:(j + 1) * CR] = wt

    # residual convs: block-banded matrices per kh stacked into (3*128, 128);
    # out-of-range column blocks encode the W-direction zero padding.
    wb = np.asarray(wblk_oihw)                                 # (NB, 2, CR, CR, K1, K1)
    wcat = np.zeros((NB, 2, K1 * L, L), np.float32)
    for bi in range(NB):
        for li in range(2):
            for kh in range(K1):
                for kw in range(K1):
                    wt = wb[bi, li, :, :, kh, kw].T            # [c_in, o_out]
                    for j in range(W1):
                        jp = j + kw - PAD
                        if 0 <= jp < W1:
                            wcat[bi, li,
                                 kh * L + jp * CR: kh * L + (jp + 1) * CR,
                                 j * CR:(j + 1) * CR] = wt

    # final linear: fold the torch CHW flatten order into the weight so the
    # kernel can consume the HWC-flattened (i, j, c) activations directly.
    wf_np = np.asarray(wf).reshape(OUT_DIM, CR, H1, W1)        # [o, c, i, j]
    wf_hwc = np.ascontiguousarray(
        np.transpose(wf_np, (2, 3, 1, 0))).reshape(F_FEAT, OUT_DIM)

    return {
        "w0cat": jnp.asarray(w0cat, jnp.bfloat16),
        "b0p": jnp.tile(jnp.asarray(b0), W1).reshape(1, L).astype(jnp.float32),
        "wcat": jnp.asarray(wcat, jnp.bfloat16),
        "bblkp": jnp.tile(jnp.asarray(bblk), (1, 1, W1))
                    .reshape(NB, 2, 1, L).astype(jnp.float32),
        "wf_hwc": jnp.asarray(wf_hwc, jnp.bfloat16),
        "bfp": jnp.asarray(bf).reshape(1, OUT_DIM).astype(jnp.float32),
    }


# ------------------------- pure-JAX reference (for checking) ------------------
def _reference_forward(x_flat, w0_oihw, b0, wblk_oihw, bblk, wf, bf):
    dn = ("NCHW", "OIHW", "NCHW")
    x = x_flat.reshape((-1, CIN, H, W))
    y = lax.conv_general_dilated(x, w0_oihw, (STRIDE, STRIDE), "VALID",
                                 dimension_numbers=dn) + b0.reshape(1, CR, 1, 1)
    y = jnp.maximum(y, 0.0)
    for bi in range(NB):
        res = y
        t = lax.conv_general_dilated(y, wblk_oihw[bi, 0], (1, 1), "SAME",
                                     dimension_numbers=dn) + bblk[bi, 0].reshape(1, CR, 1, 1)
        t = jnp.maximum(t, 0.0)
        t = lax.conv_general_dilated(t, wblk_oihw[bi, 1], (1, 1), "SAME",
                                     dimension_numbers=dn) + bblk[bi, 1].reshape(1, CR, 1, 1)
        y = jnp.maximum(res + t, 0.0)
    flat = y.reshape(y.shape[0], -1)
    return flat @ wf.T + bf


# --------------------------------- main ---------------------------------------
if __name__ == "__main__":
    key = jax.random.PRNGKey(0)
    ks = jax.random.split(key, 8)

    # deterministic synthetic parameters in torch layouts (OIHW conv weights,
    # (out, in) linear weight), then folded into kernel-friendly form.
    w0_oihw = 0.1 * jax.random.normal(ks[0], (CR, CIN, K0, K0), jnp.float32)
    b0 = 0.1 * jax.random.normal(ks[1], (CR,), jnp.float32)
    wblk_oihw = 0.1 * jax.random.normal(ks[2], (NB, 2, CR, CR, K1, K1), jnp.float32)
    bblk = 0.1 * jax.random.normal(ks[3], (NB, 2, CR), jnp.float32)
    wf = 0.05 * jax.random.normal(ks[4], (OUT_DIM, F_FEAT), jnp.float32)
    bf = 0.1 * jax.random.normal(ks[5], (OUT_DIM,), jnp.float32)

    params = prepare_params(w0_oihw, b0, wblk_oihw, bblk, wf, bf)

    x_flat = 0.5 * jax.random.normal(ks[6], (B, CIN * H * W), jnp.float32)

    out = residual_conv2d_encoder(x_flat, params)
    out = jax.block_until_ready(out)

    ref = _reference_forward(x_flat, w0_oihw, b0, wblk_oihw, bblk, wf, bf)
    ref = jax.block_until_ready(ref)

    assert out.shape == (B, OUT_DIM), out.shape
    # bf16 matmul operands vs the f32 reference -> loosened tolerance.
    max_err = float(jnp.max(jnp.abs(out - ref)))
    assert jnp.allclose(out, ref, atol=5e-2, rtol=5e-2), max_err

    print("KERNEL_OK")
</pallas_src>

<mosaic_0001>
module attributes {stable_mosaic.version = 11 : i64} {
  func.func @_encoder_kernel(%arg0: i32, %arg1: memref<2x18x128xf32, #tpu.memory_space<vmem>>, %arg2: memref<384x128xbf16, #tpu.memory_space<vmem>>, %arg3: memref<1x128xf32, #tpu.memory_space<vmem>>, %arg4: memref<2x2x384x128xbf16, #tpu.memory_space<vmem>>, %arg5: memref<2x2x1x128xf32, #tpu.memory_space<vmem>>, %arg6: memref<2048x32xbf16, #tpu.memory_space<any>>, %arg7: memref<1x32xf32, #tpu.memory_space<vmem>>, %arg8: memref<2x1x32xf32, #tpu.memory_space<vmem>>, %arg9: memref<2048x32xbf16, #tpu.memory_space<vmem>>, %arg10: memref<2x2048xf32, #tpu.memory_space<vmem>>, %arg11: memref<!tpu.dma_semaphore, #tpu.memory_space<semaphore_mem>>) attributes {dimension_semantics = [#tpu.dimension_semantics<parallel>], iteration_bounds = array<i64: 1>, scalar_prefetch = 0 : i64, scratch_operands = 3 : i64, tpu.core_type = #tpu.core_type<tc>, window_params = [{transform_indices = @transform_0, window_bounds = array<i64: 2, 18, 128>}, {pipeline_mode = #tpu.pipeline_mode<synchronous>, transform_indices = @transform_1, window_bounds = array<i64: 384, 128>}, {pipeline_mode = #tpu.pipeline_mode<synchronous>, transform_indices = @transform_2, window_bounds = array<i64: 1, 128>}, {pipeline_mode = #tpu.pipeline_mode<synchronous>, transform_indices = @transform_3, window_bounds = array<i64: 2, 2, 384, 128>}, {pipeline_mode = #tpu.pipeline_mode<synchronous>, transform_indices = @transform_4, window_bounds = array<i64: 2, 2, 1, 128>}, {}, {pipeline_mode = #tpu.pipeline_mode<synchronous>, transform_indices = @transform_6, window_bounds = array<i64: 1, 32>}, {transform_indices = @transform_7, window_bounds = array<i64: 2, 1, 32>}]} {
    tpu.enqueue_dma source(%arg6 : memref<2048x32xbf16, #tpu.memory_space<any>>) target(%arg9 : memref<2048x32xbf16, #tpu.memory_space<vmem>>) target_semaphore(%arg11 : memref<!tpu.dma_semaphore, #tpu.memory_space<semaphore_mem>>)
    %c0 = arith.constant 0 : index
    %c0_0 = arith.constant 0 : index
    %c0_1 = arith.constant 0 : index
    %0 = vector.load %arg1[%c0, %c0_0, %c0_1] : memref<2x18x128xf32, #tpu.memory_space<vmem>>, vector<2x16x128xf32>
    %1 = vector.shape_cast %0 : vector<2x16x128xf32> to vector<32x128xf32>
    %c0_2 = arith.constant 0 : index
    %c1 = arith.constant 1 : index
    %c0_3 = arith.constant 0 : index
    %2 = vector.load %arg1[%c0_2, %c1, %c0_3] : memref<2x18x128xf32, #tpu.memory_space<vmem>>, vector<2x16x128xf32>
    %3 = vector.shape_cast %2 : vector<2x16x128xf32> to vector<32x128xf32>
    %c0_4 = arith.constant 0 : index
    %c2 = arith.constant 2 : index
    %c0_5 = arith.constant 0 : index
    %4 = vector.load %arg1[%c0_4, %c2, %c0_5] : memref<2x18x128xf32, #tpu.memory_space<vmem>>, vector<2x16x128xf32>
    %5 = vector.shape_cast %4 : vector<2x16x128xf32> to vector<32x128xf32>
    %6 = tpu.concatenate %1, %3, %5 in 1 : vector<32x128xf32>, vector<32x128xf32>, vector<32x128xf32> -> vector<32x384xf32>
    %7 = arith.truncf %6 : vector<32x384xf32> to vector<32x384xbf16>
    %c0_6 = arith.constant 0 : index
    %c0_7 = arith.constant 0 : index
    %8 = vector.load %arg2[%c0_6, %c0_7] : memref<384x128xbf16, #tpu.memory_space<vmem>>, vector<384x128xbf16>
    %cst = arith.constant dense<0.000000e+00> : vector<32x128xf32>
    %9 = tpu.matmul %7, %8, %cst {dimension_numbers = #tpu.dot_dimension_numbers<[1], [0], [0], [1], [0, 0, 1, 1], [], []>} : vector<32x384xbf16>, vector<384x128xbf16>, vector<32x128xf32> -> vector<32x128xf32>
    %c0_8 = arith.constant 0 : index
    %c0_9 = arith.constant 0 : index
    %10 = vector.load %arg3[%c0_8, %c0_9] : memref<1x128xf32, #tpu.memory_space<vmem>>, vector<1x128xf32>
    %11 = vector.broadcast %10 : vector<1x128xf32> to vector<32x128xf32>
    %12 = arith.addf %9, %11 : vector<32x128xf32>
    %cst_10 = arith.constant 0.000000e+00 : f32
    %13 = vector.broadcast %cst_10 : f32 to vector<32x128xf32>
    %14 = arith.maximumf %12, %13 : vector<32x128xf32>
    %15 = tpu.iota {dimensions = array<i32: 0>} : vector<32x128xi32>
    %c16_i32 = arith.constant 16 : i32
    %c0_i32 = arith.constant 0 : i32
    %16 = arith.cmpi eq, %c16_i32, %c0_i32 : i32
    %c1_i32 = arith.constant 1 : i32
    %17 = arith.select %16, %c1_i32, %c16_i32 : i32
    %18 = vector.broadcast %17 : i32 to vector<32x128xi32>
    %19 = arith.remsi %15, %18 : vector<32x128xi32>
    %c0_i32_11 = arith.constant 0 : i32
    %20 = vector.broadcast %c0_i32_11 : i32 to vector<32x128xi32>
    %21 = arith.cmpi ne, %19, %20 : vector<32x128xi32>
    %c0_i32_12 = arith.constant 0 : i32
    %22 = vector.broadcast %c0_i32_12 : i32 to vector<32x128xi32>
    %23 = arith.cmpi slt, %19, %22 : vector<32x128xi32>
    %c0_i32_13 = arith.constant 0 : i32
    %24 = arith.cmpi slt, %17, %c0_i32_13 : i32
    %25 = vector.broadcast %24 : i1 to vector<32x128xi1>
    %26 = vector.broadcast %25 : vector<32x128xi1> to vector<32x128xi1>
    %27 = arith.xori %23, %26 : vector<32x128xi1>
    %28 = arith.andi %27, %21 : vector<32x128xi1>
    %29 = vector.broadcast %17 : i32 to vector<32x128xi32>
    %30 = arith.addi %19, %29 : vector<32x128xi32>
    %31 = arith.select %28, %30, %19 : vector<32x128xi1>, vector<32x128xi32>
    %c0_i32_14 = arith.constant 0 : i32
    %32 = vector.broadcast %c0_i32_14 : i32 to vector<32x128xi32>
    %33 = arith.cmpi eq, %31, %32 : vector<32x128xi32>
    %c15_i32 = arith.constant 15 : i32
    %34 = vector.broadcast %c15_i32 : i32 to vector<32x128xi32>
    %35 = arith.cmpi eq, %31, %34 : vector<32x128xi32>
    %cst_15 = arith.constant 0.000000e+00 : f32
    %36 = vector.broadcast %cst_15 : f32 to vector<1x128xf32>
    %37 = vector.extract_strided_slice %14 {offsets = [0, 0], sizes = [31, 128], strides = [1, 1]} : vector<32x128xf32> to vector<31x128xf32>
    %38 = tpu.concatenate %36, %37 in 0 : vector<1x128xf32>, vector<31x128xf32> -> vector<32x128xf32>
    %39 = vector.extract_strided_slice %14 {offsets = [1, 0], sizes = [31, 128], strides = [1, 1]} : vector<32x128xf32> to vector<31x128xf32>
    %40 = tpu.concatenate %39, %36 in 0 : vector<31x128xf32>, vector<1x128xf32> -> vector<32x128xf32>
    %cst_16 = arith.constant 0.000000e+00 : f32
    %41 = vector.broadcast %cst_16 : f32 to vector<32x128xf32>
    %42 = arith.select %33, %41, %38 : vector<32x128xi1>, vector<32x128xf32>
    %cst_17 = arith.constant 0.000000e+00 : f32
    %43 = vector.broadcast %cst_17 : f32 to vector<32x128xf32>
    %44 = arith.select %35, %43, %40 : vector<32x128xi1>, vector<32x128xf32>
    %45 = tpu.concatenate %42, %14, %44 in 1 : vector<32x128xf32>, vector<32x128xf32>, vector<32x128xf32> -> vector<32x384xf32>
    %46 = arith.truncf %45 : vector<32x384xf32> to vector<32x384xbf16>
    %c0_18 = arith.constant 0 : index
    %c0_19 = arith.constant 0 : index
    %c0_20 = arith.constant 0 : index
    %c0_21 = arith.constant 0 : index
    %47 = vector.load %arg4[%c0_18, %c0_19, %c0_20, %c0_21] : memref<2x2x384x128xbf16, #tpu.memory_space<vmem>>, vector<1x1x384x128xbf16>
    %48 = vector.shape_cast %47 : vector<1x1x384x128xbf16> to vector<384x128xbf16>
    %cst_22 = arith.constant dense<0.000000e+00> : vector<32x128xf32>
    %49 = tpu.matmul %46, %48, %cst_22 {dimension_numbers = #tpu.dot_dimension_numbers<[1], [0], [0], [1], [0, 0, 1, 1], [], []>} : vector<32x384xbf16>, vector<384x128xbf16>, vector<32x128xf32> -> vector<32x128xf32>
    %c0_23 = arith.constant 0 : index
    %c0_24 = arith.constant 0 : index
    %c0_25 = arith.constant 0 : index
    %c0_26 = arith.constant 0 : index
    %50 = vector.load %arg5[%c0_23, %c0_24, %c0_25, %c0_26] : memref<2x2x1x128xf32, #tpu.memory_space<vmem>>, vector<1x1x1x128xf32>
    %51 = vector.shape_cast %50 : vector<1x1x1x128xf32> to vector<1x128xf32>
    %52 = vector.broadcast %51 : vector<1x128xf32> to vector<32x128xf32>
    %53 = arith.addf %49, %52 : vector<32x128xf32>
    %cst_27 = arith.constant 0.000000e+00 : f32
    %54 = vector.broadcast %cst_27 : f32 to vector<32x128xf32>
    %55 = arith.maximumf %53, %54 : vector<32x128xf32>
    %56 = vector.extract_strided_slice %55 {offsets = [0, 0], sizes = [31, 128], strides = [1, 1]} : vector<32x128xf32> to vector<31x128xf32>
    %57 = tpu.concatenate %36, %56 in 0 : vector<1x128xf32>, vector<31x128xf32> -> vector<32x128xf32>
    %58 = vector.extract_strided_slice %55 {offsets = [1, 0], sizes = [31, 128], strides = [1, 1]} : vector<32x128xf32> to vector<31x128xf32>
    %59 = tpu.concatenate %58, %36 in 0 : vector<31x128xf32>, vector<1x128xf32> -> vector<32x128xf32>
    %cst_28 = arith.constant 0.000000e+00 : f32
    %60 = vector.broadcast %cst_28 : f32 to vector<32x128xf32>
    %61 = arith.select %33, %60, %57 : vector<32x128xi1>, vector<32x128xf32>
    %cst_29 = arith.constant 0.000000e+00 : f32
    %62 = vector.broadcast %cst_29 : f32 to vector<32x128xf32>
    %63 = arith.select %35, %62, %59 : vector<32x128xi1>, vector<32x128xf32>
    %64 = tpu.concatenate %61, %55, %63 in 1 : vector<32x128xf32>, vector<32x128xf32>, vector<32x128xf32> -> vector<32x384xf32>
    %65 = arith.truncf %64 : vector<32x384xf32> to vector<32x384xbf16>
    %c0_30 = arith.constant 0 : index
    %c1_31 = arith.constant 1 : index
    %c0_32 = arith.constant 0 : index
    %c0_33 = arith.constant 0 : index
    %66 = vector.load %arg4[%c0_30, %c1_31, %c0_32, %c0_33] : memref<2x2x384x128xbf16, #tpu.memory_space<vmem>>, vector<1x1x384x128xbf16>
    %67 = vector.shape_cast %66 : vector<1x1x384x128xbf16> to vector<384x128xbf16>
    %cst_34 = arith.constant dense<0.000000e+00> : vector<32x128xf32>
    %68 = tpu.matmul %65, %67, %cst_34 {dimension_numbers = #tpu.dot_dimension_numbers<[1], [0], [0], [1], [0, 0, 1, 1], [], []>} : vector<32x384xbf16>, vector<384x128xbf16>, vector<32x128xf32> -> vector<32x128xf32>
    %c0_35 = arith.constant 0 : index
    %c1_36 = arith.constant 1 : index
    %c0_37 = arith.constant 0 : index
    %c0_38 = arith.constant 0 : index
    %69 = vector.load %arg5[%c0_35, %c1_36, %c0_37, %c0_38] : memref<2x2x1x128xf32, #tpu.memory_space<vmem>>, vector<1x1x1x128xf32>
    %70 = vector.shape_cast %69 : vector<1x1x1x128xf32> to vector<1x128xf32>
    %71 = vector.broadcast %70 : vector<1x128xf32> to vector<32x128xf32>
    %72 = arith.addf %68, %71 : vector<32x128xf32>
    %73 = arith.addf %14, %72 : vector<32x128xf32>
    %cst_39 = arith.constant 0.000000e+00 : f32
    %74 = vector.broadcast %cst_39 : f32 to vector<32x128xf32>
    %75 = arith.maximumf %73, %74 : vector<32x128xf32>
    %76 = vector.extract_strided_slice %75 {offsets = [0, 0], sizes = [31, 128], strides = [1, 1]} : vector<32x128xf32> to vector<31x128xf32>
    %77 = tpu.concatenate %36, %76 in 0 : vector<1x128xf32>, vector<31x128xf32> -> vector<32x128xf32>
    %78 = vector.extract_strided_slice %75 {offsets = [1, 0], sizes = [31, 128], strides = [1, 1]} : vector<32x128xf32> to vector<31x128xf32>
    %79 = tpu.concatenate %78, %36 in 0 : vector<31x128xf32>, vector<1x128xf32> -> vector<32x128xf32>
    %cst_40 = arith.constant 0.000000e+00 : f32
    %80 = vector.broadcast %cst_40 : f32 to vector<32x128xf32>
    %81 = arith.select %33, %80, %77 : vector<32x128xi1>, vector<32x128xf32>
    %cst_41 = arith.constant 0.000000e+00 : f32
    %82 = vector.broadcast %cst_41 : f32 to vector<32x128xf32>
    %83 = arith.select %35, %82, %79 : vector<32x128xi1>, vector<32x128xf32>
    %84 = tpu.concatenate %81, %75, %83 in 1 : vector<32x128xf32>, vector<32x128xf32>, vector<32x128xf32> -> vector<32x384xf32>
    %85 = arith.truncf %84 : vector<32x384xf32> to vector<32x384xbf16>
    %c1_42 = arith.constant 1 : index
    %c0_43 = arith.constant 0 : index
    %c0_44 = arith.constant 0 : index
    %c0_45 = arith.constant 0 : index
    %86 = vector.load %arg4[%c1_42, %c0_43, %c0_44, %c0_45] : memref<2x2x384x128xbf16, #tpu.memory_space<vmem>>, vector<1x1x384x128xbf16>
    %87 = vector.shape_cast %86 : vector<1x1x384x128xbf16> to vector<384x128xbf16>
    %cst_46 = arith.constant dense<0.000000e+00> : vector<32x128xf32>
    %88 = tpu.matmul %85, %87, %cst_46 {dimension_numbers = #tpu.dot_dimension_numbers<[1], [0], [0], [1], [0, 0, 1, 1], [], []>} : vector<32x384xbf16>, vector<384x128xbf16>, vector<32x128xf32> -> vector<32x128xf32>
    %c1_47 = arith.constant 1 : index
    %c0_48 = arith.constant 0 : index
    %c0_49 = arith.constant 0 : index
    %c0_50 = arith.constant 0 : index
    %89 = vector.load %arg5[%c1_47, %c0_48, %c0_49, %c0_50] : memref<2x2x1x128xf32, #tpu.memory_space<vmem>>, vector<1x1x1x128xf32>
    %90 = vector.shape_cast %89 : vector<1x1x1x128xf32> to vector<1x128xf32>
    %91 = vector.broadcast %90 : vector<1x128xf32> to vector<32x128xf32>
    %92 = arith.addf %88, %91 : vector<32x128xf32>
    %cst_51 = arith.constant 0.000000e+00 : f32
    %93 = vector.broadcast %cst_51 : f32 to vector<32x128xf32>
    %94 = arith.maximumf %92, %93 : vector<32x128xf32>
    %95 = vector.extract_strided_slice %94 {offsets = [0, 0], sizes = [31, 128], strides = [1, 1]} : vector<32x128xf32> to vector<31x128xf32>
    %96 = tpu.concatenate %36, %95 in 0 : vector<1x128xf32>, vector<31x128xf32> -> vector<32x128xf32>
    %97 = vector.extract_strided_slice %94 {offsets = [1, 0], sizes = [31, 128], strides = [1, 1]} : vector<32x128xf32> to vector<31x128xf32>
    %98 = tpu.concatenate %97, %36 in 0 : vector<31x128xf32>, vector<1x128xf32> -> vector<32x128xf32>
    %cst_52 = arith.constant 0.000000e+00 : f32
    %99 = vector.broadcast %cst_52 : f32 to vector<32x128xf32>
    %100 = arith.select %33, %99, %96 : vector<32x128xi1>, vector<32x128xf32>
    %cst_53 = arith.constant 0.000000e+00 : f32
    %101 = vector.broadcast %cst_53 : f32 to vector<32x128xf32>
    %102 = arith.select %35, %101, %98 : vector<32x128xi1>, vector<32x128xf32>
    %103 = tpu.concatenate %100, %94, %102 in 1 : vector<32x128xf32>, vector<32x128xf32>, vector<32x128xf32> -> vector<32x384xf32>
    %104 = arith.truncf %103 : vector<32x384xf32> to vector<32x384xbf16>
    %c1_54 = arith.constant 1 : index
    %c1_55 = arith.constant 1 : index
    %c0_56 = arith.constant 0 : index
    %c0_57 = arith.constant 0 : index
    %105 = vector.load %arg4[%c1_54, %c1_55, %c0_56, %c0_57] : memref<2x2x384x128xbf16, #tpu.memory_space<vmem>>, vector<1x1x384x128xbf16>
    %106 = vector.shape_cast %105 : vector<1x1x384x128xbf16> to vector<384x128xbf16>
    %cst_58 = arith.constant dense<0.000000e+00> : vector<32x128xf32>
    %107 = tpu.matmul %104, %106, %cst_58 {dimension_numbers = #tpu.dot_dimension_numbers<[1], [0], [0], [1], [0, 0, 1, 1], [], []>} : vector<32x384xbf16>, vector<384x128xbf16>, vector<32x128xf32> -> vector<32x128xf32>
    %c1_59 = arith.constant 1 : index
    %c1_60 = arith.constant 1 : index
    %c0_61 = arith.constant 0 : index
    %c0_62 = arith.constant 0 : index
    %108 = vector.load %arg5[%c1_59, %c1_60, %c0_61, %c0_62] : memref<2x2x1x128xf32, #tpu.memory_space<vmem>>, vector<1x1x1x128xf32>
    %109 = vector.shape_cast %108 : vector<1x1x1x128xf32> to vector<1x128xf32>
    %110 = vector.broadcast %109 : vector<1x128xf32> to vector<32x128xf32>
    %111 = arith.addf %107, %110 : vector<32x128xf32>
    %112 = arith.addf %75, %111 : vector<32x128xf32>
    %cst_63 = arith.constant 0.000000e+00 : f32
    %113 = vector.broadcast %cst_63 : f32 to vector<32x128xf32>
    %114 = arith.maximumf %112, %113 : vector<32x128xf32>
    %115 = vector.shape_cast %114 : vector<32x128xf32> to vector<2x16x128xf32>
    %116 = vector.extract_strided_slice %115 {offsets = [0, 0, 0], sizes = [2, 1, 128], strides = [1, 1, 1]} : vector<2x16x128xf32> to vector<2x1x128xf32>
    %117 = vector.shape_cast %116 : vector<2x1x128xf32> to vector<2x128xf32>
    %c0_64 = arith.constant 0 : index
    %c0_65 = arith.constant 0 : index
    %118 = vector.load %arg10[%c0_64, %c0_65] : memref<2x2048xf32, #tpu.memory_space<vmem>>, vector<2x128xf32>
    tpu.vector_store %arg10[%c0_64, %c0_65], %117 {strides = array<i32>} : memref<2x2048xf32, #tpu.memory_space<vmem>>, vector<2x128xf32>,
    %119 = vector.extract_strided_slice %115 {offsets = [0, 1, 0], sizes = [2, 1, 128], strides = [1, 1, 1]} : vector<2x16x128xf32> to vector<2x1x128xf32>
    %120 = vector.shape_cast %119 : vector<2x1x128xf32> to vector<2x128xf32>
    %c0_66 = arith.constant 0 : index
    %c128 = arith.constant 128 : index
    %121 = vector.load %arg10[%c0_66, %c128] : memref<2x2048xf32, #tpu.memory_space<vmem>>, vector<2x128xf32>
    tpu.vector_store %arg10[%c0_66, %c128], %120 {strides = array<i32>} : memref<2x2048xf32, #tpu.memory_space<vmem>>, vector<2x128xf32>,
    %122 = vector.extract_strided_slice %115 {offsets = [0, 2, 0], sizes = [2, 1, 128], strides = [1, 1, 1]} : vector<2x16x128xf32> to vector<2x1x128xf32>
    %123 = vector.shape_cast %122 : vector<2x1x128xf32> to vector<2x128xf32>
    %c0_67 = arith.constant 0 : index
    %c256 = arith.constant 256 : index
    %124 = vector.load %arg10[%c0_67, %c256] : memref<2x2048xf32, #tpu.memory_space<vmem>>, vector<2x128xf32>
    tpu.vector_store %arg10[%c0_67, %c256], %123 {strides = array<i32>} : memref<2x2048xf32, #tpu.memory_space<vmem>>, vector<2x128xf32>,
    %125 = vector.extract_strided_slice %115 {offsets = [0, 3, 0], sizes = [2, 1, 128], strides = [1, 1, 1]} : vector<2x16x128xf32> to vector<2x1x128xf32>
    %126 = vector.shape_cast %125 : vector<2x1x128xf32> to vector<2x128xf32>
    %c0_68 = arith.constant 0 : index
    %c384 = arith.constant 384 : index
    %127 = vector.load %arg10[%c0_68, %c384] : memref<2x2048xf32, #tpu.memory_space<vmem>>, vector<2x128xf32>
    tpu.vector_store %arg10[%c0_68, %c384], %126 {strides = array<i32>} : memref<2x2048xf32, #tpu.memory_space<vmem>>, vector<2x128xf32>,
    %128 = vector.extract_strided_slice %115 {offsets = [0, 4, 0], sizes = [2, 1, 128], strides = [1, 1, 1]} : vector<2x16x128xf32> to vector<2x1x128xf32>
    %129 = vector.shape_cast %128 : vector<2x1x128xf32> to vector<2x128xf32>
    %c0_69 = arith.constant 0 : index
    %c512 = arith.constant 512 : index
    %130 = vector.load %arg10[%c0_69, %c512] : memref<2x2048xf32, #tpu.memory_space<vmem>>, vector<2x128xf32>
    tpu.vector_store %arg10[%c0_69, %c512], %129 {strides = array<i32>} : memref<2x2048xf32, #tpu.memory_space<vmem>>, vector<2x128xf32>,
    %131 = vector.extract_strided_slice %115 {offsets = [0, 5, 0], sizes = [2, 1, 128], strides = [1, 1, 1]} : vector<2x16x128xf32> to vector<2x1x128xf32>
    %132 = vector.shape_cast %131 : vector<2x1x128xf32> to vector<2x128xf32>
    %c0_70 = arith.constant 0 : index
    %c640 = arith.constant 640 : index
    %133 = vector.load %arg10[%c0_70, %c640] : memref<2x2048xf32, #tpu.memory_space<vmem>>, vector<2x128xf32>
    tpu.vector_store %arg10[%c0_70, %c640], %132 {strides = array<i32>} : memref<2x2048xf32, #tpu.memory_space<vmem>>, vector<2x128xf32>,
    %134 = vector.extract_strided_slice %115 {offsets = [0, 6, 0], sizes = [2, 1, 128], strides = [1, 1, 1]} : vector<2x16x128xf32> to vector<2x1x128xf32>
    %135 = vector.shape_cast %134 : vector<2x1x128xf32> to vector<2x128xf32>
    %c0_71 = arith.constant 0 : index
    %c768 = arith.constant 768 : index
    %136 = vector.load %arg10[%c0_71, %c768] : memref<2x2048xf32, #tpu.memory_space<vmem>>, vector<2x128xf32>
    tpu.vector_store %arg10[%c0_71, %c768], %135 {strides = array<i32>} : memref<2x2048xf32, #tpu.memory_space<vmem>>, vector<2x128xf32>,
    %137 = vector.extract_strided_slice %115 {offsets = [0, 7, 0], sizes = [2, 1, 128], strides = [1, 1, 1]} : vector<2x16x128xf32> to vector<2x1x128xf32>
    %138 = vector.shape_cast %137 : vector<2x1x128xf32> to vector<2x128xf32>
    %c0_72 = arith.constant 0 : index
    %c896 = arith.constant 896 : index
    %139 = vector.load %arg10[%c0_72, %c896] : memref<2x2048xf32, #tpu.memory_space<vmem>>, vector<2x128xf32>
    tpu.vector_store %arg10[%c0_72, %c896], %138 {strides = array<i32>} : memref<2x2048xf32, #tpu.memory_space<vmem>>, vector<2x128xf32>,
    %140 = vector.extract_strided_slice %115 {offsets = [0, 8, 0], sizes = [2, 1, 128], strides = [1, 1, 1]} : vector<2x16x128xf32> to vector<2x1x128xf32>
    %141 = vector.shape_cast %140 : vector<2x1x128xf32> to vector<2x128xf32>
    %c0_73 = arith.constant 0 : index
    %c1024 = arith.constant 1024 : index
    %142 = vector.load %arg10[%c0_73, %c1024] : memref<2x2048xf32, #tpu.memory_space<vmem>>, vector<2x128xf32>
    tpu.vector_store %arg10[%c0_73, %c1024], %141 {strides = array<i32>} : memref<2x2048xf32, #tpu.memory_space<vmem>>, vector<2x128xf32>,
    %143 = vector.extract_strided_slice %115 {offsets = [0, 9, 0], sizes = [2, 1, 128], strides = [1, 1, 1]} : vector<2x16x128xf32> to vector<2x1x128xf32>
    %144 = vector.shape_cast %143 : vector<2x1x128xf32> to vector<2x128xf32>
    %c0_74 = arith.constant 0 : index
    %c1152 = arith.constant 1152 : index
    %145 = vector.load %arg10[%c0_74, %c1152] : memref<2x2048xf32, #tpu.memory_space<vmem>>, vector<2x128xf32>
    tpu.vector_store %arg10[%c0_74, %c1152], %144 {strides = array<i32>} : memref<2x2048xf32, #tpu.memory_space<vmem>>, vector<2x128xf32>,
    %146 = vector.extract_strided_slice %115 {offsets = [0, 10, 0], sizes = [2, 1, 128], strides = [1, 1, 1]} : vector<2x16x128xf32> to vector<2x1x128xf32>
    %147 = vector.shape_cast %146 : vector<2x1x128xf32> to vector<2x128xf32>
    %c0_75 = arith.constant 0 : index
    %c1280 = arith.constant 1280 : index
    %148 = vector.load %arg10[%c0_75, %c1280] : memref<2x2048xf32, #tpu.memory_space<vmem>>, vector<2x128xf32>
    tpu.vector_store %arg10[%c0_75, %c1280], %147 {strides = array<i32>} : memref<2x2048xf32, #tpu.memory_space<vmem>>, vector<2x128xf32>,
    %149 = vector.extract_strided_slice %115 {offsets = [0, 11, 0], sizes = [2, 1, 128], strides = [1, 1, 1]} : vector<2x16x128xf32> to vector<2x1x128xf32>
    %150 = vector.shape_cast %149 : vector<2x1x128xf32> to vector<2x128xf32>
    %c0_76 = arith.constant 0 : index
    %c1408 = arith.constant 1408 : index
    %151 = vector.load %arg10[%c0_76, %c1408] : memref<2x2048xf32, #tpu.memory_space<vmem>>, vector<2x128xf32>
    tpu.vector_store %arg10[%c0_76, %c1408], %150 {strides = array<i32>} : memref<2x2048xf32, #tpu.memory_space<vmem>>, vector<2x128xf32>,
    %152 = vector.extract_strided_slice %115 {offsets = [0, 12, 0], sizes = [2, 1, 128], strides = [1, 1, 1]} : vector<2x16x128xf32> to vector<2x1x128xf32>
    %153 = vector.shape_cast %152 : vector<2x1x128xf32> to vector<2x128xf32>
    %c0_77 = arith.constant 0 : index
    %c1536 = arith.constant 1536 : index
    %154 = vector.load %arg10[%c0_77, %c1536] : memref<2x2048xf32, #tpu.memory_space<vmem>>, vector<2x128xf32>
    tpu.vector_store %arg10[%c0_77, %c1536], %153 {strides = array<i32>} : memref<2x2048xf32, #tpu.memory_space<vmem>>, vector<2x128xf32>,
    %155 = vector.extract_strided_slice %115 {offsets = [0, 13, 0], sizes = [2, 1, 128], strides = [1, 1, 1]} : vector<2x16x128xf32> to vector<2x1x128xf32>
    %156 = vector.shape_cast %155 : vector<2x1x128xf32> to vector<2x128xf32>
    %c0_78 = arith.constant 0 : index
    %c1664 = arith.constant 1664 : index
    %157 = vector.load %arg10[%c0_78, %c1664] : memref<2x2048xf32, #tpu.memory_space<vmem>>, vector<2x128xf32>
    tpu.vector_store %arg10[%c0_78, %c1664], %156 {strides = array<i32>} : memref<2x2048xf32, #tpu.memory_space<vmem>>, vector<2x128xf32>,
    %158 = vector.extract_strided_slice %115 {offsets = [0, 14, 0], sizes = [2, 1, 128], strides = [1, 1, 1]} : vector<2x16x128xf32> to vector<2x1x128xf32>
    %159 = vector.shape_cast %158 : vector<2x1x128xf32> to vector<2x128xf32>
    %c0_79 = arith.constant 0 : index
    %c1792 = arith.constant 1792 : index
    %160 = vector.load %arg10[%c0_79, %c1792] : memref<2x2048xf32, #tpu.memory_space<vmem>>, vector<2x128xf32>
    tpu.vector_store %arg10[%c0_79, %c1792], %159 {strides = array<i32>} : memref<2x2048xf32, #tpu.memory_space<vmem>>, vector<2x128xf32>,
    %161 = vector.extract_strided_slice %115 {offsets = [0, 15, 0], sizes = [2, 1, 128], strides = [1, 1, 1]} : vector<2x16x128xf32> to vector<2x1x128xf32>
    %162 = vector.shape_cast %161 : vector<2x1x128xf32> to vector<2x128xf32>
    %c0_80 = arith.constant 0 : index
    %c1920 = arith.constant 1920 : index
    %163 = vector.load %arg10[%c0_80, %c1920] : memref<2x2048xf32, #tpu.memory_space<vmem>>, vector<2x128xf32>
    tpu.vector_store %arg10[%c0_80, %c1920], %162 {strides = array<i32>} : memref<2x2048xf32, #tpu.memory_space<vmem>>, vector<2x128xf32>,
    tpu.wait_dma2 semaphore(%arg11 : memref<!tpu.dma_semaphore, #tpu.memory_space<semaphore_mem>>) src(%arg6 : memref<2048x32xbf16, #tpu.memory_space<any>>) dst(%arg9 : memref<2048x32xbf16, #tpu.memory_space<vmem>>)
    %c0_81 = arith.constant 0 : index
    %c0_82 = arith.constant 0 : index
    %164 = vector.load %arg10[%c0_81, %c0_82] : memref<2x2048xf32, #tpu.memory_space<vmem>>, vector<2x2048xf32>
    %165 = arith.truncf %164 : vector<2x2048xf32> to vector<2x2048xbf16>
    %c0_83 = arith.constant 0 : index
    %c0_84 = arith.constant 0 : index
    %166 = vector.load %arg9[%c0_83, %c0_84] : memref<2048x32xbf16, #tpu.memory_space<vmem>>, vector<2048x32xbf16>
    %cst_85 = arith.constant dense<0.000000e+00> : vector<2x32xf32>
    %167 = tpu.matmul %165, %166, %cst_85 {dimension_numbers = #tpu.dot_dimension_numbers<[1], [0], [0], [1], [0, 0, 1, 1], [], []>} : vector<2x2048xbf16>, vector<2048x32xbf16>, vector<2x32xf32> -> vector<2x32xf32>
    %c0_86 = arith.constant 0 : index
    %c0_87 = arith.constant 0 : index
    %168 = vector.load %arg7[%c0_86, %c0_87] : memref<1x32xf32, #tpu.memory_space<vmem>>, vector<1x32xf32>
    %169 = vector.broadcast %168 : vector<1x32xf32> to vector<2x32xf32>
    %170 = arith.addf %167, %169 : vector<2x32xf32>
    %171 = vector.shape_cast %170 : vector<2x32xf32> to vector<2x1x32xf32>
    %c0_88 = arith.constant 0 : index
    %c0_89 = arith.constant 0 : index
    %c0_90 = arith.constant 0 : index
    %172 = vector.load %arg8[%c0_88, %c0_89, %c0_90] : memref<2x1x32xf32, #tpu.memory_space<vmem>>, vector<2x1x32xf32>
    tpu.vector_store %arg8[%c0_88, %c0_89, %c0_90], %171 {strides = array<i32>} : memref<2x1x32xf32, #tpu.memory_space<vmem>>, vector<2x1x32xf32>,
    return
  }
  func.func @transform_0(%arg0: i32) -> (i32, i32, i32) {
    %c0_i32 = arith.constant 0 : i32
    %c0_i32_0 = arith.constant 0 : i32
    %c0_i32_1 = arith.constant 0 : i32
    return %arg0, %c0_i32, %c0_i32_0 : i32, i32, i32
  }
  func.func @transform_1(%arg0: i32) -> (i32, i32) {
    %c0_i32 = arith.constant 0 : i32
    %c0_i32_0 = arith.constant 0 : i32
    %c0_i32_1 = arith.constant 0 : i32
    return %c0_i32, %c0_i32_0 : i32, i32
  }
  func.func @transform_2(%arg0: i32) -> (i32, i32) {
    %c0_i32 = arith.constant 0 : i32
    %c0_i32_0 = arith.constant 0 : i32
    %c0_i32_1 = arith.constant 0 : i32
    return %c0_i32, %c0_i32_0 : i32, i32
  }
  func.func @transform_3(%arg0: i32) -> (i32, i32, i32, i32) {
    %c0_i32 = arith.constant 0 : i32
    %c0_i32_0 = arith.constant 0 : i32
    %c0_i32_1 = arith.constant 0 : i32
    %c0_i32_2 = arith.constant 0 : i32
    %c0_i32_3 = arith.constant 0 : i32
    return %c0_i32, %c0_i32_0, %c0_i32_1, %c0_i32_2 : i32, i32, i32, i32
  }
  func.func @transform_4(%arg0: i32) -> (i32, i32, i32, i32) {
    %c0_i32 = arith.constant 0 : i32
    %c0_i32_0 = arith.constant 0 : i32
    %c0_i32_1 = arith.constant 0 : i32
    %c0_i32_2 = arith.constant 0 : i32
    %c0_i32_3 = arith.constant 0 : i32
    return %c0_i32, %c0_i32_0, %c0_i32_1, %c0_i32_2 : i32, i32, i32, i32
  }
  func.func @transform_6(%arg0: i32) -> (i32, i32) {
    %c0_i32 = arith.constant 0 : i32
    %c0_i32_0 = arith.constant 0 : i32
    %c0_i32_1 = arith.constant 0 : i32
    return %c0_i32, %c0_i32_0 : i32, i32
  }
  func.func @transform_7(%arg0: i32) -> (i32, i32, i32) {
    %c0_i32 = arith.constant 0 : i32
    %c0_i32_0 = arith.constant 0 : i32
    %c0_i32_1 = arith.constant 0 : i32
    return %arg0, %c0_i32, %c0_i32_0 : i32, i32, i32
  }
}

</mosaic_0001>

<bundles_post_ra>
// kernel: tpu_custom_call.1
= control target key start
LH: loop header
LB: loop body
LE: loop exit
PB: predicated region body
PF: predicated region fallthrough
CT: control target
= control target key end

     0   :  { %12 = vsyncpa [#allocation6], 0  ;;  %s6167_s0 = inlined_call_operand.vmem [shape: f32[2,18,128], index: 0, kind: input, shape index: {}]   ;;  %s6168_s1 = inlined_call_operand.vmem [shape: bf16[384,128], index: 1, kind: input, shape index: {}]   ;;  %s6169_s2 = inlined_call_operand.vmem [shape: f32[1,128], index: 2, kind: input, shape index: {}]   ;;  %s6170_s3 = inlined_call_operand.vmem [shape: bf16[2,2,384,128], index: 3, kind: input, shape index: {}]   ;;  %s6171_s4 = inlined_call_operand.vmem [shape: f32[2,2,1,128], index: 4, kind: input, shape index: {}]   ;;  %s6172_s5 = inlined_call_operand.vmem [shape: bf16[2048,32], index: 5, kind: input, shape index: {}]   ;;  %s6173_s6 = inlined_call_operand.vmem [shape: f32[1,32], index: 6, kind: input, shape index: {}]   ;;  %s6174_s7 = inlined_call_operand.hbm [shape: f32[2,1,32], index: 7, kind: output, shape index: {}]  }
   0x1   :  { %v59_v0 = vld [vmem:[%s6172_s5] sm:$0xff]  ;;  %v61_v1 = vld [vmem:[%s6172_s5 + $0x8] sm:$0xff]  ;;  %v63_v2 = vld [vmem:[%s6172_s5 + $0x10] sm:$0xff] }
   0x2   :  { %60 = vst [vmem:[#allocation2] sm:$0xff] %v59_v0  ;;  %62 = vst [vmem:[#allocation2 + $0x8] sm:$0xff] %v61_v1  ;;  %v65_v3 = vld [vmem:[%s6172_s5 + $0x18] sm:$0xff]  ;;  %v67_v4 = vld [vmem:[%s6172_s5 + $0x20] sm:$0xff] }
   0x3   :  { %64 = vst [vmem:[#allocation2 + $0x10] sm:$0xff] %v63_v2  ;;  %66 = vst [vmem:[#allocation2 + $0x18] sm:$0xff] %v65_v3  ;;  %v69_v5 = vld [vmem:[%s6172_s5 + $0x28] sm:$0xff]  ;;  %v71_v6 = vld [vmem:[%s6172_s5 + $0x30] sm:$0xff] }
   0x4   :  { %68 = vst [vmem:[#allocation2 + $0x20] sm:$0xff] %v67_v4  ;;  %v73_v7 = vld [vmem:[%s6172_s5 + $0x38] sm:$0xff]  ;;  %70 = vst [vmem:[#allocation2 + $0x28] sm:$0xff] %v69_v5  ;;  %v75_v8 = vld [vmem:[%s6172_s5 + $0x40] sm:$0xff] }
   0x5   :  { %72 = vst [vmem:[#allocation2 + $0x30] sm:$0xff] %v71_v6  ;;  %74 = vst [vmem:[#allocation2 + $0x38] sm:$0xff] %v73_v7  ;;  %v77_v9 = vld [vmem:[%s6172_s5 + $0x48] sm:$0xff]  ;;  %v79_v10 = vld [vmem:[%s6172_s5 + $0x50] sm:$0xff] }
   0x6   :  { %76 = vst [vmem:[#allocation2 + $0x40] sm:$0xff] %v75_v8  ;;  %78 = vst [vmem:[#allocation2 + $0x48] sm:$0xff] %v77_v9  ;;  %v81_v11 = vld [vmem:[%s6172_s5 + $0x58] sm:$0xff]  ;;  %v83_v12 = vld [vmem:[%s6172_s5 + $0x60] sm:$0xff] }
   0x7   :  { %80 = vst [vmem:[#allocation2 + $0x50] sm:$0xff] %v79_v10  ;;  %v85_v13 = vld [vmem:[%s6172_s5 + $0x68] sm:$0xff]  ;;  %82 = vst [vmem:[#allocation2 + $0x58] sm:$0xff] %v81_v11  ;;  %v87_v14 = vld [vmem:[%s6172_s5 + $0x70] sm:$0xff] }
   0x8   :  { %84 = vst [vmem:[#allocation2 + $0x60] sm:$0xff] %v83_v12  ;;  %86 = vst [vmem:[#allocation2 + $0x68] sm:$0xff] %v85_v13  ;;  %v89_v15 = vld [vmem:[%s6172_s5 + $0x78] sm:$0xff]  ;;  %v91_v16 = vld [vmem:[%s6172_s5 + $0x80] sm:$0xff] }
   0x9   :  { %88 = vst [vmem:[#allocation2 + $0x70] sm:$0xff] %v87_v14  ;;  %90 = vst [vmem:[#allocation2 + $0x78] sm:$0xff] %v89_v15  ;;  %v93_v17 = vld [vmem:[%s6172_s5 + $0x88] sm:$0xff]  ;;  %v95_v18 = vld [vmem:[%s6172_s5 + $0x90] sm:$0xff] }
   0xa   :  { %92 = vst [vmem:[#allocation2 + $0x80] sm:$0xff] %v91_v16  ;;  %v97_v19 = vld [vmem:[%s6172_s5 + $0x98] sm:$0xff]  ;;  %94 = vst [vmem:[#allocation2 + $0x88] sm:$0xff] %v93_v17  ;;  %v99_v20 = vld [vmem:[%s6172_s5 + $0xa0] sm:$0xff] }
   0xb   :  { %96 = vst [vmem:[#allocation2 + $0x90] sm:$0xff] %v95_v18  ;;  %98 = vst [vmem:[#allocation2 + $0x98] sm:$0xff] %v97_v19  ;;  %v101_v21 = vld [vmem:[%s6172_s5 + $0xa8] sm:$0xff]  ;;  %v103_v22 = vld [vmem:[%s6172_s5 + $0xb0] sm:$0xff] }
   0xc   :  { %100 = vst [vmem:[#allocation2 + $0xa0] sm:$0xff] %v99_v20  ;;  %102 = vst [vmem:[#allocation2 + $0xa8] sm:$0xff] %v101_v21  ;;  %v105_v23 = vld [vmem:[%s6172_s5 + $0xb8] sm:$0xff]  ;;  %v107_v24 = vld [vmem:[%s6172_s5 + $0xc0] sm:$0xff] }
   0xd   :  { %104 = vst [vmem:[#allocation2 + $0xb0] sm:$0xff] %v103_v22  ;;  %v109_v25 = vld [vmem:[%s6172_s5 + $0xc8] sm:$0xff]  ;;  %106 = vst [vmem:[#allocation2 + $0xb8] sm:$0xff] %v105_v23  ;;  %v111_v26 = vld [vmem:[%s6172_s5 + $0xd0] sm:$0xff] }
   0xe   :  { %108 = vst [vmem:[#allocation2 + $0xc0] sm:$0xff] %v107_v24  ;;  %110 = vst [vmem:[#allocation2 + $0xc8] sm:$0xff] %v109_v25  ;;  %v113_v27 = vld [vmem:[%s6172_s5 + $0xd8] sm:$0xff]  ;;  %v115_v28 = vld [vmem:[%s6172_s5 + $0xe0] sm:$0xff] }
   0xf   :  { %112 = vst [vmem:[#allocation2 + $0xd0] sm:$0xff] %v111_v26  ;;  %114 = vst [vmem:[#allocation2 + $0xd8] sm:$0xff] %v113_v27  ;;  %v117_v29 = vld [vmem:[%s6172_s5 + $0xe8] sm:$0xff]  ;;  %v119_v30 = vld [vmem:[%s6172_s5 + $0xf0] sm:$0xff] }
  0x10   :  { %116 = vst [vmem:[#allocation2 + $0xe0] sm:$0xff] %v115_v28  ;;  %v121_v31 = vld [vmem:[%s6172_s5 + $0xf8] sm:$0xff]  ;;  %118 = vst [vmem:[#allocation2 + $0xe8] sm:$0xff] %v117_v29  ;;  %v123_v32 = vld [vmem:[%s6172_s5 + $0x100] sm:$0xff] }
  0x11   :  { %120 = vst [vmem:[#allocation2 + $0xf0] sm:$0xff] %v119_v30  ;;  %122 = vst [vmem:[#allocation2 + $0xf8] sm:$0xff] %v121_v31  ;;  %v125_v33 = vld [vmem:[%s6172_s5 + $0x108] sm:$0xff]  ;;  %v127_v34 = vld [vmem:[%s6172_s5 + $0x110] sm:$0xff] }
  0x12   :  { %124 = vst [vmem:[#allocation2 + $0x100] sm:$0xff] %v123_v32  ;;  %126 = vst [vmem:[#allocation2 + $0x108] sm:$0xff] %v125_v33  ;;  %v129_v35 = vld [vmem:[%s6172_s5 + $0x118] sm:$0xff]  ;;  %v131_v36 = vld [vmem:[%s6172_s5 + $0x120] sm:$0xff] }
  0x13   :  { %128 = vst [vmem:[#allocation2 + $0x110] sm:$0xff] %v127_v34  ;;  %v133_v37 = vld [vmem:[%s6172_s5 + $0x128] sm:$0xff]  ;;  %130 = vst [vmem:[#allocation2 + $0x118] sm:$0xff] %v129_v35  ;;  %v135_v38 = vld [vmem:[%s6172_s5 + $0x130] sm:$0xff] }
  0x14   :  { %132 = vst [vmem:[#allocation2 + $0x120] sm:$0xff] %v131_v36  ;;  %134 = vst [vmem:[#allocation2 + $0x128] sm:$0xff] %v133_v37  ;;  %v137_v39 = vld [vmem:[%s6172_s5 + $0x138] sm:$0xff]  ;;  %v139_v40 = vld [vmem:[%s6172_s5 + $0x140] sm:$0xff] }
  0x15   :  { %136 = vst [vmem:[#allocation2 + $0x130] sm:$0xff] %v135_v38  ;;  %138 = vst [vmem:[#allocation2 + $0x138] sm:$0xff] %v137_v39  ;;  %v141_v41 = vld [vmem:[%s6172_s5 + $0x148] sm:$0xff]  ;;  %v143_v42 = vld [vmem:[%s6172_s5 + $0x150] sm:$0xff] }
  0x16   :  { %140 = vst [vmem:[#allocation2 + $0x140] sm:$0xff] %v139_v40  ;;  %v145_v43 = vld [vmem:[%s6172_s5 + $0x158] sm:$0xff]  ;;  %142 = vst [vmem:[#allocation2 + $0x148] sm:$0xff] %v141_v41  ;;  %v147_v44 = vld [vmem:[%s6172_s5 + $0x160] sm:$0xff] }
  0x17   :  { %144 = vst [vmem:[#allocation2 + $0x150] sm:$0xff] %v143_v42  ;;  %146 = vst [vmem:[#allocation2 + $0x158] sm:$0xff] %v145_v43  ;;  %v149_v45 = vld [vmem:[%s6172_s5 + $0x168] sm:$0xff]  ;;  %v151_v46 = vld [vmem:[%s6172_s5 + $0x170] sm:$0xff] }
  0x18   :  { %148 = vst [vmem:[#allocation2 + $0x160] sm:$0xff] %v147_v44  ;;  %150 = vst [vmem:[#allocation2 + $0x168] sm:$0xff] %v149_v45  ;;  %v153_v47 = vld [vmem:[%s6172_s5 + $0x178] sm:$0xff]  ;;  %v155_v48 = vld [vmem:[%s6172_s5 + $0x180] sm:$0xff] }
  0x19   :  { %152 = vst [vmem:[#allocation2 + $0x170] sm:$0xff] %v151_v46  ;;  %v157_v49 = vld [vmem:[%s6172_s5 + $0x188] sm:$0xff]  ;;  %154 = vst [vmem:[#allocation2 + $0x178] sm:$0xff] %v153_v47  ;;  %v159_v50 = vld [vmem:[%s6172_s5 + $0x190] sm:$0xff] }
  0x1a   :  { %156 = vst [vmem:[#allocation2 + $0x180] sm:$0xff] %v155_v48  ;;  %158 = vst [vmem:[#allocation2 + $0x188] sm:$0xff] %v157_v49  ;;  %v161_v51 = vld [vmem:[%s6172_s5 + $0x198] sm:$0xff]  ;;  %v163_v52 = vld [vmem:[%s6172_s5 + $0x1a0] sm:$0xff] }
  0x1b   :  { %160 = vst [vmem:[#allocation2 + $0x190] sm:$0xff] %v159_v50  ;;  %162 = vst [vmem:[#allocation2 + $0x198] sm:$0xff] %v161_v51  ;;  %v165_v53 = vld [vmem:[%s6172_s5 + $0x1a8] sm:$0xff]  ;;  %v167_v54 = vld [vmem:[%s6172_s5 + $0x1b0] sm:$0xff] }
  0x1c   :  { %164 = vst [vmem:[#allocation2 + $0x1a0] sm:$0xff] %v163_v52  ;;  %v169_v55 = vld [vmem:[%s6172_s5 + $0x1b8] sm:$0xff]  ;;  %166 = vst [vmem:[#allocation2 + $0x1a8] sm:$0xff] %v165_v53  ;;  %v171_v56 = vld [vmem:[%s6172_s5 + $0x1c0] sm:$0xff] }
  0x1d   :  { %168 = vst [vmem:[#allocation2 + $0x1b0] sm:$0xff] %v167_v54  ;;  %170 = vst [vmem:[#allocation2 + $0x1b8] sm:$0xff] %v169_v55  ;;  %v173_v57 = vld [vmem:[%s6172_s5 + $0x1c8] sm:$0xff]  ;;  %v175_v58 = vld [vmem:[%s6172_s5 + $0x1d0] sm:$0xff] }
  0x1e   :  { %172 = vst [vmem:[#allocation2 + $0x1c0] sm:$0xff] %v171_v56  ;;  %174 = vst [vmem:[#allocation2 + $0x1c8] sm:$0xff] %v173_v57  ;;  %v177_v59 = vld [vmem:[%s6172_s5 + $0x1d8] sm:$0xff]  ;;  %v179_v60 = vld [vmem:[%s6172_s5 + $0x1e0] sm:$0xff] }
  0x1f   :  { %176 = vst [vmem:[#allocation2 + $0x1d0] sm:$0xff] %v175_v58  ;;  %v181_v61 = vld [vmem:[%s6172_s5 + $0x1e8] sm:$0xff]  ;;  %178 = vst [vmem:[#allocation2 + $0x1d8] sm:$0xff] %v177_v59  ;;  %v183_v62 = vld [vmem:[%s6172_s5 + $0x1f0] sm:$0xff] }
  0x20   :  { %180 = vst [vmem:[#allocation2 + $0x1e0] sm:$0xff] %v179_v60  ;;  %182 = vst [vmem:[#allocation2 + $0x1e8] sm:$0xff] %v181_v61  ;;  %v185_v63 = vld [vmem:[%s6172_s5 + $0x1f8] sm:$0xff]  ;;  %v187_v0 = vld [vmem:[%s6172_s5 + $0x200] sm:$0xff] }
  0x21   :  { %184 = vst [vmem:[#allocation2 + $0x1f0] sm:$0xff] %v183_v62  ;;  %186 = vst [vmem:[#allocation2 + $0x1f8] sm:$0xff] %v185_v63  ;;  %v189_v1 = vld [vmem:[%s6172_s5 + $0x208] sm:$0xff]  ;;  %v191_v2 = vld [vmem:[%s6172_s5 + $0x210] sm:$0xff] }
  0x22   :  { %188 = vst [vmem:[#allocation2 + $0x200] sm:$0xff] %v187_v0  ;;  %v193_v3 = vld [vmem:[%s6172_s5 + $0x218] sm:$0xff]  ;;  %190 = vst [vmem:[#allocation2 + $0x208] sm:$0xff] %v189_v1  ;;  %v195_v4 = vld [vmem:[%s6172_s5 + $0x220] sm:$0xff] }
  0x23   :  { %192 = vst [vmem:[#allocation2 + $0x210] sm:$0xff] %v191_v2  ;;  %194 = vst [vmem:[#allocation2 + $0x218] sm:$0xff] %v193_v3  ;;  %v197_v5 = vld [vmem:[%s6172_s5 + $0x228] sm:$0xff]  ;;  %v199_v6 = vld [vmem:[%s6172_s5 + $0x230] sm:$0xff] }
  0x24   :  { %196 = vst [vmem:[#allocation2 + $0x220] sm:$0xff] %v195_v4  ;;  %198 = vst [vmem:[#allocation2 + $0x228] sm:$0xff] %v197_v5  ;;  %v201_v7 = vld [vmem:[%s6172_s5 + $0x238] sm:$0xff]  ;;  %v203_v8 = vld [vmem:[%s6172_s5 + $0x240] sm:$0xff] }
  0x25   :  { %200 = vst [vmem:[#allocation2 + $0x230] sm:$0xff] %v199_v6  ;;  %v205_v9 = vld [vmem:[%s6172_s5 + $0x248] sm:$0xff]  ;;  %202 = vst [vmem:[#allocation2 + $0x238] sm:$0xff] %v201_v7  ;;  %v207_v10 = vld [vmem:[%s6172_s5 + $0x250] sm:$0xff] }
  0x26   :  { %204 = vst [vmem:[#allocation2 + $0x240] sm:$0xff] %v203_v8  ;;  %206 = vst [vmem:[#allocation2 + $0x248] sm:$0xff] %v205_v9  ;;  %v209_v11 = vld [vmem:[%s6172_s5 + $0x258] sm:$0xff]  ;;  %v211_v12 = vld [vmem:[%s6172_s5 + $0x260] sm:$0xff] }
  0x27   :  { %208 = vst [vmem:[#allocation2 + $0x250] sm:$0xff] %v207_v10  ;;  %210 = vst [vmem:[#allocation2 + $0x258] sm:$0xff] %v209_v11  ;;  %v213_v13 = vld [vmem:[%s6172_s5 + $0x268] sm:$0xff]  ;;  %v215_v14 = vld [vmem:[%s6172_s5 + $0x270] sm:$0xff] }
  0x28   :  { %212 = vst [vmem:[#allocation2 + $0x260] sm:$0xff] %v211_v12  ;;  %v217_v15 = vld [vmem:[%s6172_s5 + $0x278] sm:$0xff]  ;;  %214 = vst [vmem:[#allocation2 + $0x268] sm:$0xff] %v213_v13  ;;  %v219_v16 = vld [vmem:[%s6172_s5 + $0x280] sm:$0xff] }
  0x29   :  { %216 = vst [vmem:[#allocation2 + $0x270] sm:$0xff] %v215_v14  ;;  %218 = vst [vmem:[#allocation2 + $0x278] sm:$0xff] %v217_v15  ;;  %v221_v17 = vld [vmem:[%s6172_s5 + $0x288] sm:$0xff]  ;;  %v223_v18 = vld [vmem:[%s6172_s5 + $0x290] sm:$0xff] }
  0x2a   :  { %220 = vst [vmem:[#allocation2 + $0x280] sm:$0xff] %v219_v16  ;;  %222 = vst [vmem:[#allocation2 + $0x288] sm:$0xff] %v221_v17  ;;  %v225_v19 = vld [vmem:[%s6172_s5 + $0x298] sm:$0xff]  ;;  %v227_v20 = vld [vmem:[%s6172_s5 + $0x2a0] sm:$0xff] }
  0x2b   :  { %224 = vst [vmem:[#allocation2 + $0x290] sm:$0xff] %v223_v18  ;;  %v229_v21 = vld [vmem:[%s6172_s5 + $0x2a8] sm:$0xff]  ;;  %226 = vst [vmem:[#allocation2 + $0x298] sm:$0xff] %v225_v19  ;;  %v231_v22 = vld [vmem:[%s6172_s5 + $0x2b0] sm:$0xff] }
  0x2c   :  { %228 = vst [vmem:[#allocation2 + $0x2a0] sm:$0xff] %v227_v20  ;;  %230 = vst [vmem:[#allocation2 + $0x2a8] sm:$0xff] %v229_v21  ;;  %v233_v23 = vld [vmem:[%s6172_s5 + $0x2b8] sm:$0xff]  ;;  %v235_v24 = vld [vmem:[%s6172_s5 + $0x2c0] sm:$0xff] }
  0x2d   :  { %232 = vst [vmem:[#allocation2 + $0x2b0] sm:$0xff] %v231_v22  ;;  %234 = vst [vmem:[#allocation2 + $0x2b8] sm:$0xff] %v233_v23  ;;  %v237_v25 = vld [vmem:[%s6172_s5 + $0x2c8] sm:$0xff]  ;;  %v239_v26 = vld [vmem:[%s6172_s5 + $0x2d0] sm:$0xff] }
  0x2e   :  { %236 = vst [vmem:[#allocation2 + $0x2c0] sm:$0xff] %v235_v24  ;;  %v241_v27 = vld [vmem:[%s6172_s5 + $0x2d8] sm:$0xff]  ;;  %238 = vst [vmem:[#allocation2 + $0x2c8] sm:$0xff] %v237_v25  ;;  %v243_v28 = vld [vmem:[%s6172_s5 + $0x2e0] sm:$0xff] }
  0x2f   :  { %240 = vst [vmem:[#allocation2 + $0x2d0] sm:$0xff] %v239_v26  ;;  %242 = vst [vmem:[#allocation2 + $0x2d8] sm:$0xff] %v241_v27  ;;  %v245_v29 = vld [vmem:[%s6172_s5 + $0x2e8] sm:$0xff]  ;;  %v247_v30 = vld [vmem:[%s6172_s5 + $0x2f0] sm:$0xff] }
  0x30   :  { %244 = vst [vmem:[#allocation2 + $0x2e0] sm:$0xff] %v243_v28  ;;  %246 = vst [vmem:[#allocation2 + $0x2e8] sm:$0xff] %v245_v29  ;;  %v249_v31 = vld [vmem:[%s6172_s5 + $0x2f8] sm:$0xff]  ;;  %v251_v32 = vld [vmem:[%s6172_s5 + $0x300] sm:$0xff] }
  0x31   :  { %248 = vst [vmem:[#allocation2 + $0x2f0] sm:$0xff] %v247_v30  ;;  %v253_v33 = vld [vmem:[%s6172_s5 + $0x308] sm:$0xff]  ;;  %250 = vst [vmem:[#allocation2 + $0x2f8] sm:$0xff] %v249_v31  ;;  %v255_v34 = vld [vmem:[%s6172_s5 + $0x310] sm:$0xff] }
  0x32   :  { %252 = vst [vmem:[#allocation2 + $0x300] sm:$0xff] %v251_v32  ;;  %254 = vst [vmem:[#allocation2 + $0x308] sm:$0xff] %v253_v33  ;;  %v257_v35 = vld [vmem:[%s6172_s5 + $0x318] sm:$0xff]  ;;  %v259_v36 = vld [vmem:[%s6172_s5 + $0x320] sm:$0xff] }
  0x33   :  { %256 = vst [vmem:[#allocation2 + $0x310] sm:$0xff] %v255_v34  ;;  %258 = vst [vmem:[#allocation2 + $0x318] sm:$0xff] %v257_v35  ;;  %v261_v37 = vld [vmem:[%s6172_s5 + $0x328] sm:$0xff]  ;;  %v263_v38 = vld [vmem:[%s6172_s5 + $0x330] sm:$0xff] }
  0x34   :  { %260 = vst [vmem:[#allocation2 + $0x320] sm:$0xff] %v259_v36  ;;  %v265_v39 = vld [vmem:[%s6172_s5 + $0x338] sm:$0xff]  ;;  %262 = vst [vmem:[#allocation2 + $0x328] sm:$0xff] %v261_v37  ;;  %v267_v40 = vld [vmem:[%s6172_s5 + $0x340] sm:$0xff] }
  0x35   :  { %264 = vst [vmem:[#allocation2 + $0x330] sm:$0xff] %v263_v38  ;;  %266 = vst [vmem:[#allocation2 + $0x338] sm:$0xff] %v265_v39  ;;  %v269_v41 = vld [vmem:[%s6172_s5 + $0x348] sm:$0xff]  ;;  %v271_v42 = vld [vmem:[%s6172_s5 + $0x350] sm:$0xff] }
  0x36   :  { %268 = vst [vmem:[#allocation2 + $0x340] sm:$0xff] %v267_v40  ;;  %270 = vst [vmem:[#allocation2 + $0x348] sm:$0xff] %v269_v41  ;;  %v273_v43 = vld [vmem:[%s6172_s5 + $0x358] sm:$0xff]  ;;  %v275_v44 = vld [vmem:[%s6172_s5 + $0x360] sm:$0xff] }
  0x37   :  { %272 = vst [vmem:[#allocation2 + $0x350] sm:$0xff] %v271_v42  ;;  %v277_v45 = vld [vmem:[%s6172_s5 + $0x368] sm:$0xff]  ;;  %274 = vst [vmem:[#allocation2 + $0x358] sm:$0xff] %v273_v43  ;;  %v279_v46 = vld [vmem:[%s6172_s5 + $0x370] sm:$0xff] }
  0x38   :  { %276 = vst [vmem:[#allocation2 + $0x360] sm:$0xff] %v275_v44  ;;  %278 = vst [vmem:[#allocation2 + $0x368] sm:$0xff] %v277_v45  ;;  %v281_v47 = vld [vmem:[%s6172_s5 + $0x378] sm:$0xff]  ;;  %v283_v48 = vld [vmem:[%s6172_s5 + $0x380] sm:$0xff] }
  0x39   :  { %280 = vst [vmem:[#allocation2 + $0x370] sm:$0xff] %v279_v46  ;;  %282 = vst [vmem:[#allocation2 + $0x378] sm:$0xff] %v281_v47  ;;  %v285_v49 = vld [vmem:[%s6172_s5 + $0x388] sm:$0xff]  ;;  %v287_v50 = vld [vmem:[%s6172_s5 + $0x390] sm:$0xff] }
  0x3a   :  { %284 = vst [vmem:[#allocation2 + $0x380] sm:$0xff] %v283_v48  ;;  %v289_v51 = vld [vmem:[%s6172_s5 + $0x398] sm:$0xff]  ;;  %286 = vst [vmem:[#allocation2 + $0x388] sm:$0xff] %v285_v49  ;;  %v291_v52 = vld [vmem:[%s6172_s5 + $0x3a0] sm:$0xff] }
  0x3b   :  { %288 = vst [vmem:[#allocation2 + $0x390] sm:$0xff] %v287_v50  ;;  %290 = vst [vmem:[#allocation2 + $0x398] sm:$0xff] %v289_v51  ;;  %v293_v53 = vld [vmem:[%s6172_s5 + $0x3a8] sm:$0xff]  ;;  %v295_v54 = vld [vmem:[%s6172_s5 + $0x3b0] sm:$0xff] }
  0x3c   :  { %292 = vst [vmem:[#allocation2 + $0x3a0] sm:$0xff] %v291_v52  ;;  %294 = vst [vmem:[#allocation2 + $0x3a8] sm:$0xff] %v293_v53  ;;  %v297_v55 = vld [vmem:[%s6172_s5 + $0x3b8] sm:$0xff]  ;;  %v299_v56 = vld [vmem:[%s6172_s5 + $0x3c0] sm:$0xff] }
  0x3d   :  { %296 = vst [vmem:[#allocation2 + $0x3b0] sm:$0xff] %v295_v54  ;;  %v301_v57 = vld [vmem:[%s6172_s5 + $0x3c8] sm:$0xff]  ;;  %298 = vst [vmem:[#allocation2 + $0x3b8] sm:$0xff] %v297_v55  ;;  %v303_v58 = vld [vmem:[%s6172_s5 + $0x3d0] sm:$0xff] }
  0x3e   :  { %300 = vst [vmem:[#allocation2 + $0x3c0] sm:$0xff] %v299_v56  ;;  %302 = vst [vmem:[#allocation2 + $0x3c8] sm:$0xff] %v301_v57  ;;  %v305_v59 = vld [vmem:[%s6172_s5 + $0x3d8] sm:$0xff]  ;;  %v307_v60 = vld [vmem:[%s6172_s5 + $0x3e0] sm:$0xff] }
  0x3f   :  { %304 = vst [vmem:[#allocation2 + $0x3d0] sm:$0xff] %v303_v58  ;;  %306 = vst [vmem:[#allocation2 + $0x3d8] sm:$0xff] %v305_v59  ;;  %v309_v61 = vld [vmem:[%s6172_s5 + $0x3e8] sm:$0xff]  ;;  %v311_v62 = vld [vmem:[%s6172_s5 + $0x3f0] sm:$0xff] }
  0x40   :  { %308 = vst [vmem:[#allocation2 + $0x3e0] sm:$0xff] %v307_v60  ;;  %v313_v63 = vld [vmem:[%s6172_s5 + $0x3f8] sm:$0xff]  ;;  %310 = vst [vmem:[#allocation2 + $0x3e8] sm:$0xff] %v309_v61 }
  0x41   :  { %312 = vst [vmem:[#allocation2 + $0x3f0] sm:$0xff] %v311_v62  ;;  %314 = vst [vmem:[#allocation2 + $0x3f8] sm:$0xff] %v313_v63 }
  0x42   :  { %322 = vsyncadd [#allocation4], 16384  ;;  %v4776_v0 = vld [vmem:[%s6168_s1 + $0x78] sm:$0xff]   ;;  %v4779_v3 = vld [vmem:[%s6168_s1 + $0x70] sm:$0xff]   ;;  %vm707_vm0 = vcmask 1040384   ;;  %vm5052_vm2 = vmmov 1  }
  0x43   :  { %v4777_v1 = vld [vmem:[%s6168_s1 + $0x38] sm:$0xff]   ;;  %4304 = vmatprep.subr.bf16.mxu0 %v4776_v0  ;;  %v4780_v4 = vld [vmem:[%s6168_s1 + $0x30] sm:$0xff]   ;;  %v4782_v6 = vld [vmem:[%s6168_s1 + $0x68] sm:$0xff]   ;;  %vm720_vm4 = vcmask 1046528   ;;  %vm2112_vm11 = vcmask 1041409   ;;  %vm2114_vm12 = vcmask 1043459  }
  0x44   :  { %v4778_v2 = vld [vmem:[%s6168_s1 + $0xb8] sm:$0xff]   ;;  %4305 = vmatpush3.bf16.msra.mxu0 %v4777_v1  ;;  %v4781_v5 = vld [vmem:[%s6168_s1 + $0xb0] sm:$0xff]   ;;  %v4783_v7 = vld [vmem:[%s6168_s1 + $0x28] sm:$0xff]   ;;  %vm2116_vm13 = vcmask 1045509   ;;  %vm2118_vm14 = vcmask 1047559  }
  0x45   :  { %4670 = vmatprep.subr.bf16.mxu1 %v4778_v2  ;;  %4306 = vmatprep.subr.bf16.mxu0 %v4779_v3  ;;  %v4784_v8 = vld [vmem:[%s6168_s1 + $0xa8] sm:$0xff]   ;;  %v4785_v9 = vld [vmem:[%s6168_s1 + $0x60] sm:$0xff]   ;;  %v4788_v12 = vld [vmem:[%s6168_s1 + $0x58] sm:$0xff]  }
  0x46   :  { %4671 = vmatpush3.bf16.msra.mxu1 %v4778_v2  ;;  %v4786_v10 = vld [vmem:[%s6168_s1 + $0x20] sm:$0xff]   ;;  %v4790_v13 = vld [vmem:[%s6168_s1 + $0x98] sm:$0xff]   ;;  %v4791_v15 = vld [vmem:[%s6168_s1 + $0x50] sm:$0xff]  }
  0x47   :  { %4672 = vmatprep.subr.bf16.mxu1 %v4781_v5  ;;  %v4787_v11 = vld [vmem:[%s6168_s1 + $0xa0] sm:$0xff]   ;;  %v4789_v14 = vld [vmem:[%s6168_s1 + $0x18] sm:$0xff]   ;;  %v4793_v16 = vld [vmem:[%s6168_s1 + $0x90] sm:$0xff]  }
  0x48   :  { %4307 = vmatpush3.bf16.msra.mxu0 %v4780_v4  ;;  %v4792_v17 = vld [vmem:[%s6168_s1 + $0x10] sm:$0xff]   ;;  %v4794_v18 = vld [vmem:[%s6168_s1 + $0x48] sm:$0xff]   ;;  %v4797_v23 = vld [vmem:[%s6168_s1 + $0x40] sm:$0xff]  }
  0x49   :  { %4308 = vmatprep.subr.bf16.mxu0 %v4782_v6  ;;  %v4796_v19 = vld [vmem:[%s6168_s1 + $0x88] sm:$0xff]   ;;  %v4798_v26 = vld [vmem:[%s6168_s1] sm:$0xff]   ;;  %v4800_v35 = vld [vmem:[%s6170_s3 + $0x78] sm:$0xff]  }
  0x4a   :  { %4673 = vmatpush3.bf16.msra.mxu1 %v4781_v5  ;;  %v4795_v20 = vld [vmem:[%s6168_s1 + $0x8] sm:$0xff]   ;;  %v4799_v27 = vld [vmem:[%s6168_s1 + $0x80] sm:$0xff]   ;;  %v4801_v39 = vld [vmem:[%s6170_s3 + $0x38] sm:$0xff]  }
  0x4b   :  { %4674 = vmatprep.subr.bf16.mxu1 %v4784_v8  ;;  %v327_v21 = vld [vmem:[%s6167_s0 + $0x1] sm:$0xff]  ;;  %v328_v22 = vld [vmem:[%s6167_s0 + $0x9] sm:$0xff]  ;;  %v329_v32 = vld [vmem:[%s6167_s0 + $0x19] sm:$0xff] }
  0x4c   :  { %4309 = vmatpush3.bf16.msra.mxu0 %v4783_v7  ;;  %v336_v24 = vpack.c.bf16 %v328_v22, %v327_v21  ;;  %v331_v25 = vld [vmem:[%s6167_s0 + $0x2] sm:$0xff]  ;;  %v332_v28 = vld [vmem:[%s6167_s0 + $0xa] sm:$0xff]  ;;  %v333_v33 = vld [vmem:[%s6167_s0 + $0x1a] sm:$0xff] }
  0x4d   :  { %4310 = vmatprep.subr.bf16.mxu0 %v4785_v9  ;;  %v323_v29 = vld [vmem:[%s6167_s0] sm:$0xff]  ;;  %v324_v30 = vld [vmem:[%s6167_s0 + $0x8] sm:$0xff]  ;;  %v337_v31 = vpack.c.bf16 %v332_v28, %v331_v25  ;;  %v4802_v41 = vld [vmem:[%s6170_s3 + $0x70] sm:$0xff]  }
  0x4e   :  { %4675 = vmatpush3.bf16.msra.mxu1 %v4784_v8  ;;  %572 = vmatprep.mubr.bf16.mxu0 %v336_v24  ;;  %v330_v34 = vld [vmem:[%s6167_s0 + $0x21] sm:$0xff]  ;;  %v335_v37 = vpack.c.bf16 %v324_v30, %v323_v29  ;;  %v325_v42 = vld [vmem:[%s6167_s0 + $0x18] sm:$0xff]  ;;  %v4803_v44 = vld [vmem:[%s6170_s3 + $0x30] sm:$0xff]   ;;  %v642_v8 = vlaneseq }
  0x4f   :  { %4676 = vmatprep.subr.bf16.mxu1 %v4787_v11  ;;  %4686 = vmatprep.mubr.bf16.mxu1 %v337_v31  ;;  %v334_v36 = vld [vmem:[%s6167_s0 + $0x22] sm:$0xff]  ;;  %v339_v38 = vpack.c.bf16 %v330_v34, %v329_v32  ;;  %v4805_v45 = vld [vmem:[%s6170_s3 + $0xb8] sm:$0xff]   ;;  %v4808_v50 = vld [vmem:[%s6170_s3 + $0xb0] sm:$0xff]  }
  0x50   :  { %4311 = vmatpush3.bf16.msra.mxu0 %v4786_v10  ;;  %v340_v40 = vpack.c.bf16 %v334_v36, %v333_v33  ;;  %v326_v43 = vld [vmem:[%s6167_s0 + $0x20] sm:$0xff]  ;;  %v4804_v46 = vld [vmem:[%s6170_s3 + $0x68] sm:$0xff]   ;;  %v4810_v52 = vld [vmem:[%s6170_s3 + $0x58] sm:$0xff]  }
  0x51   :  { %4312 = vmatprep.subr.bf16.mxu0 %v4788_v12  ;;  %v4806_v47 = vld [vmem:[%s6170_s3 + $0x28] sm:$0xff]   ;;  %v338_v48 = vpack.c.bf16 %v326_v43, %v325_v42  ;;  %v4807_v49 = vld [vmem:[%s6170_s3 + $0x60] sm:$0xff]   ;;  %v4812_v54 = vld [vmem:[%s6170_s3 + $0x18] sm:$0xff]  }
  0x52   :  { %4677 = vmatpush3.bf16.msra.mxu1 %v4787_v11  ;;  %v4809_v51 = vld [vmem:[%s6170_s3 + $0x20] sm:$0xff]   ;;  %v4811_v53 = vld [vmem:[%s6170_s3 + $0xa8] sm:$0xff]   ;;  %v4813_v55 = vld [vmem:[%s6170_s3 + $0x50] sm:$0xff]  }
  0x53   :  { %4678 = vmatprep.subr.bf16.mxu1 %v4790_v13  ;;  %v4814_v56 = vld [vmem:[%s6170_s3 + $0xa0] sm:$0xff]   ;;  %v4815_v57 = vld [vmem:[%s6170_s3 + $0x10] sm:$0xff]   ;;  %v4816_v58 = vld [vmem:[%s6170_s3 + $0x48] sm:$0xff]  }
  0x54   :  { %4313 = vmatpush3.bf16.msra.mxu0 %v4789_v14  ;;  %v4817_v59 = vld [vmem:[%s6170_s3 + $0x98] sm:$0xff]   ;;  %v4818_v60 = vld [vmem:[%s6170_s3 + $0x8] sm:$0xff]   ;;  %v4819_v61 = vld [vmem:[%s6170_s3 + $0x40] sm:$0xff]  }
  0x55   :  { %4314 = vmatprep.subr.bf16.mxu0 %v4791_v15  ;;  %v4820_v62 = vld [vmem:[%s6170_s3 + $0x90] sm:$0xff]   ;;  %v4821_v63 = vld [vmem:[%s6170_s3] sm:$0xff]   ;;  %v4822_v0 = vld [vmem:[%s6170_s3 + $0x88] sm:$0xff]   ;;  %v5674_v15 = vshrl.u32 %v642_v8, 7 }
  0x56   :  { %4679 = vmatpush3.bf16.msra.mxu1 %v4790_v13  ;;  %v4823_v1 = vld [vmem:[%s6170_s3 + $0x80] sm:$0xff]   ;;  %v4824_v2 = vld [vmem:[%s6170_s3 + $0x138] sm:$0xff]  }
  0x57   :  { %4680 = vmatprep.subr.bf16.mxu1 %v4793_v16  ;;  %v5668_v3 = vld [vmem:[%s6170_s3 + $0x178] sm:$0xff]   ;;  %v3834_v7 = vld [vmem:[%s6169_s2] ss:$0 sm:$0xff]  ;;  %v644_v24 = vadd.s32 8, %v5674_v15  ;;  %v645_v29 = vadd.s32 16, %v5674_v15  ;;  %v646_v34 = vadd.s32 24, %v5674_v15 }
  0x58   :  { %4315 = vmatpush3.bf16.msra.mxu0 %v4792_v17 }
  0x59   :  { %4316 = vmatprep.subr.bf16.mxu0 %v4794_v18  ;;  %v658_v33 = vand.u32 15, %v644_v24  ;;  %v4843_v24 = vld [vmem:[%s6170_s3 + $0xc8] sm:$0xff]  }
  0x5a   :  { %4681 = vmatpush3.bf16.msra.mxu1 %v4793_v16 }
  0x5b   :  { %4682 = vmatprep.subr.bf16.mxu1 %v4796_v19  ;;  %vm4302_vm5 = vcmp.ne.s32.totalorder %v658_v33, 15 }
  0x5c   :  { %4317 = vmatpush3.bf16.msra.mxu0 %v4795_v20  ;;  %vm5717_vm7 = vmpackc.low %vm4302_vm5, %vm5052_vm2 }
  0x5d   :  { %4318 = vmatprep.subr.bf16.mxu0 %v4797_v23  ;;  %v651_v23 = vand.u32 15, %v5674_v15 }
  0x5e   :  { %4683 = vmatpush3.bf16.msra.mxu1 %v4796_v19 }
  0x5f   :  { %4684 = vmatprep.subr.bf16.mxu1 %v4799_v27  ;;  %vm4300_vm1 = vcmp.ne.s32.totalorder %v651_v23, 0  ;;  %v4842_v23 = vld [vmem:[%s6170_s3 + $0x150] sm:$0xff]  }
  0x60   :  { %4319 = vmatpush3.bf16.msra.mxu0 %v4798_v26  ;;  %vm5694_vm3 = vmpackc.low %vm5052_vm2, %vm4300_vm1 }
  0x61   :  { %4342 = vmatprep.subr.bf16.mxu0 %v4800_v35 }
  0x62   :  { %4685 = vmatpush3.bf16.msra.mxu1 %v4799_v27 }
  0x63   :  { %573 = vmatmul.mubr.bf16.vlgmr.msra.gmra.mxu0 %v335_v37  ;;  %4690 = vmatprep.subr.bf16.mxu1 %v4805_v45 }
  0x64   :  { %580 = vmatprep.mubr.bf16.mxu0 %v339_v38  ;;  %4343 = vmatpush3.bf16.msra.mxu0 %v4801_v39 }
  0x65   :  { %4687 = vmatmul.mubr.bf16.vlgmr.msra.gmra.mxu1 %v340_v40  ;;  %4344 = vmatprep.subr.bf16.mxu0 %v4802_v41  ;;  %v665_v40 = vand.u32 15, %v645_v29  ;;  %v4848_v29 = vld [vmem:[%s6170_s3 + $0x1f8] sm:$0xff]  }
  0x66   :  { %4691 = vmatpush3.bf16.msra.mxu1 %v4805_v45 }
  0x67   :  { %4692 = vmatprep.subr.bf16.mxu1 %v4808_v50  ;;  %vm5708_vm6 = vcmp.ne.s32.totalorder %v665_v40, 0 }
  0x68   :  { %4345 = vmatpush3.bf16.msra.mxu0 %v4803_v44  ;;  %vm5734_vm9 = vmpackc.low %vm5052_vm2, %vm5708_vm6 }
  0x69   :  { %4346 = vmatprep.subr.bf16.mxu0 %v4804_v46  ;;  %v4825_v46 = vld [vmem:[%s6170_s3 + $0xf8] sm:$0xff]  }
  0x6a   :  { %4693 = vmatpush3.bf16.msra.mxu1 %v4808_v50 }
  0x6b   :  { %581 = vmatmul.mubr.bf16.gmra.mxu0 %v338_v48  ;;  %4694 = vmatprep.subr.bf16.mxu1 %v4811_v53  ;;  %v672_v48 = vand.u32 15, %v646_v34 }
  0x6c   :  { %4347 = vmatpush3.bf16.msra.mxu0 %v4806_v47 }
  0x6d   :  { %4348 = vmatprep.subr.bf16.mxu0 %v4807_v49  ;;  %v4826_v49 = vld [vmem:[%s6170_s3 + $0x130] sm:$0xff]   ;;  %vm4303_vm8 = vcmp.ne.s32.totalorder %v672_v48, 15 }
  0x6e   :  { %4695 = vmatpush3.bf16.msra.mxu1 %v4811_v53  ;;  %vm5743_vm10 = vmpackc.low %vm4303_vm8, %vm5052_vm2 }
  0x6f   :  { %4696 = vmatprep.subr.bf16.mxu1 %v4814_v56 }
  0x70   :  { %4349 = vmatpush3.bf16.msra.mxu0 %v4809_v51 }
  0x71   :  { %4350 = vmatprep.subr.bf16.mxu0 %v4810_v52 }
  0x72   :  { %4697 = vmatpush3.bf16.msra.mxu1 %v4814_v56 }
  0x73   :  { %4698 = vmatprep.subr.bf16.mxu1 %v4817_v59 }
  0x74   :  { %4351 = vmatpush3.bf16.msra.mxu0 %v4812_v54 }
  0x75   :  { %4352 = vmatprep.subr.bf16.mxu0 %v4813_v55 }
  0x76   :  { %4699 = vmatpush3.bf16.msra.mxu1 %v4817_v59  ;;  %v4828_v59 = vld [vmem:[%s6170_s3 + $0xf0] sm:$0xff]  }
  0x77   :  { %4700 = vmatprep.subr.bf16.mxu1 %v4820_v62 }
  0x78   :  { %4353 = vmatpush3.bf16.msra.mxu0 %v4815_v57 }
  0x79   :  { %4354 = vmatprep.subr.bf16.mxu0 %v4816_v58 }
  0x7a   :  { %4701 = vmatpush3.bf16.msra.mxu1 %v4820_v62 }
  0x7b   :  { %4702 = vmatprep.subr.bf16.mxu1 %v4822_v0 }
  0x7c   :  { %4355 = vmatpush3.bf16.msra.mxu0 %v4818_v60 }
  0x7d   :  { %4356 = vmatprep.subr.bf16.mxu0 %v4819_v61 }
  0x7e   :  { %4703 = vmatpush3.bf16.msra.mxu1 %v4822_v0 }
  0x7f   :  { %4704 = vmatprep.subr.bf16.mxu1 %v4823_v1 }
  0x80   :  { %4357 = vmatpush3.bf16.msra.mxu0 %v4821_v63 }
  0x81   :  { %4380 = vmatprep.subr.bf16.mxu0 %v4824_v2 }
  0x82   :  { %4705 = vmatpush3.bf16.msra.mxu1 %v4823_v1 }
  0x83   :  { %4710 = vmatprep.subr.bf16.mxu1 %v5668_v3 }
 0x123   :  { %v4320_v4 = vpop.f32.mrf.mxu0 }
 0x125   :  { %v4321_v5 = vpop.f32.mrf.mxu0  ;;  %v4688_v6 = vpop.f32.mrf.mxu1 }
 0x126   :  { %v4322_v9 = vadd.f32 %v4321_v5, %v4320_v4 }
 0x127   :  { %v4323_v10 = vpop.f32.mrf.mxu0  ;;  %v623_v11 = vpop.f32.mrf.mxu1 }
 0x128   :  { %v575_v12 = vadd.f32 %v4322_v9, %v3834_v7  ;;  %v4829_v9 = vld [vmem:[%s6170_s3 + $0x128] sm:$0xff]  }
 0x129   :  { %v4324_v13 = vpop.f32.mrf.mxu0  ;;  %v4689_v14 = vpop.f32.mrf.mxu1 }
 0x12a   :  { %v624_v16 = vadd.f32 %v623_v11, %v575_v12  ;;  %v4325_v17 = vadd.f32 %v4324_v13, %v4323_v10  ;;  %v4830_v10 = vld [vmem:[%s6170_s3 + $0x170] sm:$0xff]   ;;  %v4831_v11 = vld [vmem:[%s6170_s3 + $0xe8] sm:$0xff]   ;;  %v4834_v13 = vld [vmem:[%s6170_s3 + $0xe0] sm:$0xff]  }
 0x12b   :  { %v4326_v18 = vpop.f32.mrf.mxu0  ;;  %v626_v21 = vpop.f32.mrf.mxu1  ;;  %v4833_v12 = vld [vmem:[%s6170_s3 + $0x168] sm:$0xff]  }
 0x12c   :  { %v5676_v19 = vmax.f32 %v624_v16, 0.0  ;;  %v578_v20 = vadd.f32 %v4325_v17, %v3834_v7  ;;  %v4836_v16 = vld [vmem:[%s6170_s3 + $0x160] sm:$0xff]   ;;  %v4837_v17 = vld [vmem:[%s6170_s3 + $0xd8] sm:$0xff]  }
 0x12d   :  { %v4327_v22 = vpop.f32.mrf.mxu0 }
 0x12e   :  { %v627_v25 = vadd.f32 %v626_v21, %v578_v20  ;;  %v4328_v26 = vadd.f32 %v4327_v22, %v4326_v18  ;;  %v708_v27 = vrot.slane %v5676_v19, 7  ;;  %v721_v50 = vrot.slane %v5676_v19, 1  ;;  %v4838_v18 = vld [vmem:[%s6170_s3 + $0x110] sm:$0xff]   ;;  %v4839_v20 = vld [vmem:[%s6170_s3 + $0x158] sm:$0xff]   ;;  %v4841_v22 = vld [vmem:[%s6170_s3 + $0x108] sm:$0xff]  }
 0x12f   :  { %v4329_v28 = vpop.f32.mrf.mxu0  ;;  %v4840_v21 = vld [vmem:[%s6170_s3 + $0xd0] sm:$0xff]  }
 0x130   :  { %v5682_v30 = vmax.f32 %v627_v25, 0.0  ;;  %v583_v31 = vadd.f32 %v4328_v26, %v3834_v7  ;;  %v719_v38 = vsel %vm707_vm0, 0.0, %v708_v27  ;;  %v4844_v25 = vld [vmem:[%s6170_s3 + $0x100] sm:$0xff]   ;;  %v4845_v26 = vld [vmem:[%s6170_s3 + $0x148] sm:$0xff]  }
 0x131   :  { %v4330_v32 = vpop.f32.mrf.mxu0 }
 0x132   :  { %v709_v35 = vrot.slane %v5682_v30, 7  ;;  %v632_v36 = vadd.f32 %v4688_v6, %v583_v31  ;;  %v4331_v37 = vadd.f32 %v4330_v32, %v4329_v28  ;;  %v742_v39 = vpack.c.bf16 %v5682_v30, %v5676_v19  ;;  %v4847_v28 = vld [vmem:[%s6170_s3 + $0x140] sm:$0xff]   ;;  %v5815_v31 = vld [vmem:[%s6170_s3 + $0x238] sm:$0xff]  }
 0x133   :  { %v722_v42 = vrot.slane %v5682_v30, 1 }
 0x134   :  { %v710_v41 = vsel %vm707_vm0, %v708_v27, %v709_v35  ;;  %v5691_v43 = vmax.f32 %v632_v36, 0.0  ;;  %v586_v44 = vadd.f32 %v4331_v37, %v3834_v7  ;;  %978 = vmatprep.mubr.bf16.mxu0 %v742_v39  ;;  %v4846_v27 = vld [vmem:[%s6170_s3 + $0xc0] sm:$0xff]  }
 0x135   :  { %v3886_v47 = vpack.c.bf16 %v710_v41, %v719_v38  ;;  %v723_v55 = vsel %vm720_vm4, %v721_v50, %v722_v42  ;;  %v3859_v37 = vld [vmem:[%s6171_s4] ss:$0 sm:$0xff] }
 0x136   :  { %v635_v51 = vadd.f32 %v4689_v14, %v586_v44  ;;  %v724_v52 = vrot.slane %v5691_v43, 1  ;;  %v711_v58 = vrot.slane %v5691_v43, 7  ;;  %v4835_v14 = vld [vmem:[%s6170_s3 + $0x118] sm:$0xff]  }
 0x137   :  { %3887 = vmatmul.mubr.msk.bf16.vlgmr.msra.gmra.mxu0 %vm5694_vm3, %v3886_v47 }
 0x138   :  { %v5712_v54 = vmax.f32 %v635_v51, 0.0  ;;  %v725_v56 = vsel %vm720_vm4, %v722_v42, %v724_v52  ;;  %4381 = vmatpush3.bf16.msra.mxu0 %v4825_v46  ;;  %v712_v1 = vsel %vm707_vm0, %v709_v35, %v711_v58 }
 0x139   :  { %v3894_v60 = vpack.c.bf16 %v725_v56, %v723_v55  ;;  %4382 = vmatprep.subr.bf16.mxu0 %v4826_v49 }
 0x13a   :  { %v726_v61 = vrot.slane %v5712_v54, 1  ;;  %v745_v62 = vpack.c.bf16 %v5712_v54, %v5691_v43  ;;  %v713_v63 = vrot.slane %v5712_v54, 7 }
 0x13b   :  { %4706 = vmatprep.mubr.msk.bf16.mxu1 %vm5717_vm7, %v3894_v60 }
 0x13c   :  { %986 = vmatprep.mubr.bf16.mxu0 %v745_v62  ;;  %v714_v2 = vsel %vm707_vm0, %v711_v58, %v713_v63  ;;  %v727_v4 = vsel %vm720_vm4, %v724_v52, %v726_v61  ;;  %v732_v5 = vsel %vm720_vm4, %v726_v61, 0.0  ;;  %4383 = vmatpush3.bf16.msra.mxu0 %v4828_v59 }
 0x13d   :  { %v3890_v7 = vpack.c.bf16 %v714_v2, %v712_v1  ;;  %v3898_v8 = vpack.c.bf16 %v732_v5, %v727_v4  ;;  %4384 = vmatprep.subr.bf16.mxu0 %v4829_v9 }
 0x13f   :  { %3891 = vmatmul.mubr.msk.bf16.gmra.mxu0 %vm5734_vm9, %v3890_v7  ;;  %4707 = vmatmul.mubr.msk.bf16.vlgmr.msra.gmra.mxu1 %vm5743_vm10, %v3898_v8 }
 0x140   :  { %4711 = vmatpush3.bf16.msra.mxu1 %v5668_v3  ;;  %4385 = vmatpush3.bf16.msra.mxu0 %v4831_v11  ;;  %v4832_v3 = vld [vmem:[%s6170_s3 + $0x120] sm:$0xff]  }
 0x141   :  { %4712 = vmatprep.subr.bf16.mxu1 %v4830_v10  ;;  %4386 = vmatprep.subr.bf16.mxu0 %v4832_v3 }
 0x144   :  { %4713 = vmatpush3.bf16.msra.mxu1 %v4830_v10  ;;  %4387 = vmatpush3.bf16.msra.mxu0 %v4834_v13  ;;  %v4849_v13 = vld [vmem:[%s6170_s3 + $0x1b8] sm:$0xff]  }
 0x145   :  { %4714 = vmatprep.subr.bf16.mxu1 %v4833_v12  ;;  %4388 = vmatprep.subr.bf16.mxu0 %v4835_v14 }
 0x148   :  { %4715 = vmatpush3.bf16.msra.mxu1 %v4833_v12  ;;  %4389 = vmatpush3.bf16.msra.mxu0 %v4837_v17 }
 0x149   :  { %4716 = vmatprep.subr.bf16.mxu1 %v4836_v16  ;;  %4390 = vmatprep.subr.bf16.mxu0 %v4838_v18  ;;  %v4850_v18 = vld [vmem:[%s6170_s3 + $0x1f0] sm:$0xff]  }
 0x14c   :  { %4717 = vmatpush3.bf16.msra.mxu1 %v4836_v16  ;;  %4391 = vmatpush3.bf16.msra.mxu0 %v4840_v21 }
 0x14d   :  { %4718 = vmatprep.subr.bf16.mxu1 %v4839_v20  ;;  %4392 = vmatprep.subr.bf16.mxu0 %v4841_v22 }
 0x150   :  { %4719 = vmatpush3.bf16.msra.mxu1 %v4839_v20  ;;  %4393 = vmatpush3.bf16.msra.mxu0 %v4843_v24 }
 0x151   :  { %4720 = vmatprep.subr.bf16.mxu1 %v4842_v23  ;;  %4394 = vmatprep.subr.bf16.mxu0 %v4844_v25 }
 0x154   :  { %4721 = vmatpush3.bf16.msra.mxu1 %v4842_v23  ;;  %4395 = vmatpush3.bf16.msra.mxu0 %v4846_v27  ;;  %v4852_v27 = vld [vmem:[%s6170_s3 + $0x1e8] sm:$0xff]  }
 0x155   :  { %4722 = vmatprep.subr.bf16.mxu1 %v4845_v26  ;;  %4418 = vmatprep.subr.bf16.mxu0 %v4848_v29 }
 0x158   :  { %4723 = vmatpush3.bf16.msra.mxu1 %v4845_v26  ;;  %v4851_v26 = vld [vmem:[%s6170_s3 + $0x1b0] sm:$0xff]  }
 0x159   :  { %4724 = vmatprep.subr.bf16.mxu1 %v4847_v28 }
 0x15c   :  { %4725 = vmatpush3.bf16.msra.mxu1 %v4847_v28 }
 0x15d   :  { %4730 = vmatprep.subr.bf16.mxu1 %v5815_v31 }
 0x1f7   :  { %v4358_v32 = vpop.f32.mrf.mxu0 }
 0x1f9   :  { %v4359_v33 = vpop.f32.mrf.mxu0 }
 0x1fa   :  { %v4360_v35 = vadd.f32 %v4359_v33, %v4358_v32  ;;  %v4854_v32 = vld [vmem:[%s6170_s3 + $0x1a8] sm:$0xff]  }
 0x1fb   :  { %v4361_v34 = vpop.f32.mrf.mxu0 }
 0x1fc   :  { %v981_v40 = vadd.f32 %v4360_v35, %v3859_v37  ;;  %v4857_v35 = vld [vmem:[%s6170_s3 + $0x1a0] sm:$0xff]  }
 0x1fd   :  { %v4362_v36 = vpop.f32.mrf.mxu0 }
 0x1fe   :  { %v4363_v41 = vadd.f32 %v4362_v36, %v4361_v34  ;;  %v4855_v34 = vld [vmem:[%s6170_s3 + $0x1e0] sm:$0xff]   ;;  %v4858_v36 = vld [vmem:[%s6170_s3 + $0x1d8] sm:$0xff]  }
 0x1ff   :  { %v4364_v38 = vpop.f32.mrf.mxu0  ;;  %v4708_v39 = vpop.f32.mrf.mxu1 }
 0x200   :  { %v984_v53 = vadd.f32 %v4363_v41, %v3859_v37  ;;  %v4863_v41 = vld [vmem:[%s6170_s3 + $0x190] sm:$0xff]  }
 0x201   :  { %v4365_v42 = vpop.f32.mrf.mxu0  ;;  %v1029_v44 = vpop.f32.mrf.mxu1 }
 0x202   :  { %v4366_v46 = vadd.f32 %v4365_v42, %v4364_v38  ;;  %v1030_v47 = vadd.f32 %v1029_v44, %v981_v40  ;;  %v4860_v38 = vld [vmem:[%s6170_s3 + $0x198] sm:$0xff]   ;;  %v4862_v40 = vld [vmem:[%s6170_s3 + $0x220] sm:$0xff]   ;;  %v4864_v42 = vld [vmem:[%s6170_s3 + $0x1c8] sm:$0xff]  }
 0x203   :  { %v4367_v48 = vpop.f32.mrf.mxu0  ;;  %v4709_v49 = vpop.f32.mrf.mxu1  ;;  %v4865_v44 = vld [vmem:[%s6170_s3 + $0x218] sm:$0xff]  }
 0x204   :  { %v989_v50 = vadd.f32 %v4366_v46, %v3859_v37  ;;  %v1044_v51 = vmax.f32 %v1030_v47, 0.0  ;;  %v4866_v46 = vld [vmem:[%s6170_s3 + $0x188] sm:$0xff]   ;;  %v4867_v47 = vld [vmem:[%s6170_s3 + $0x1c0] sm:$0xff]  }
 0x205   :  { %v4368_v52 = vpop.f32.mrf.mxu0  ;;  %v1032_v55 = vpop.f32.mrf.mxu1 }
 0x206   :  { %v1038_v56 = vadd.f32 %v4708_v39, %v989_v50  ;;  %v4369_v58 = vadd.f32 %v4368_v52, %v4367_v48  ;;  %v1033_v59 = vadd.f32 %v1032_v55, %v984_v53  ;;  %v1052_v62 = vrot.slane %v1044_v51, 7  ;;  %v4861_v39 = vld [vmem:[%s6170_s3 + $0x1d0] sm:$0xff]   ;;  %v4870_v50 = vld [vmem:[%s6170_s3 + $0x208] sm:$0xff]   ;;  %v4872_v52 = vld [vmem:[%s6170_s3 + $0x2b8] sm:$0xff]  }
 0x207   :  { %v1064_v4 = vrot.slane %v1044_v51, 1  ;;  %v4868_v48 = vld [vmem:[%s6170_s3 + $0x210] sm:$0xff]   ;;  %v5910_v53 = vld [vmem:[%s6170_s3 + $0x2f8] sm:$0xff]  }
 0x208   :  { %v1046_v60 = vmax.f32 %v1038_v56, 0.0  ;;  %v992_v61 = vadd.f32 %v4369_v58, %v3859_v37  ;;  %v1045_v63 = vmax.f32 %v1033_v59, 0.0  ;;  %v1063_v10 = vsel %vm707_vm0, 0.0, %v1052_v62  ;;  %v4859_v37 = vld [vmem:[%s6170_s3 + $0x228] sm:$0xff]   ;;  %v3949_v58 = vld [vmem:[%s6171_s4 + $0x1] ss:$0 sm:$0xff] }
 0x20a   :  { %v1067_v1 = vrot.slane %v1046_v60, 1  ;;  %v1041_v2 = vadd.f32 %v4709_v49, %v992_v61  ;;  %v1053_v5 = vrot.slane %v1045_v63, 7  ;;  %v1065_v7 = vrot.slane %v1045_v63, 1  ;;  %v4869_v49 = vld [vmem:[%s6170_s3 + $0x180] sm:$0xff]  }
 0x20b   :  { %v1085_v8 = vpack.c.bf16 %v1045_v63, %v1044_v51  ;;  %v1055_v24 = vrot.slane %v1046_v60, 7  ;;  %v4871_v51 = vld [vmem:[%s6170_s3 + $0x200] sm:$0xff]  }
 0x20c   :  { %v1047_v9 = vmax.f32 %v1041_v2, 0.0  ;;  %v1054_v11 = vsel %vm707_vm0, %v1052_v62, %v1053_v5  ;;  %v1066_v3 = vsel %vm720_vm4, %v1064_v4, %v1065_v7  ;;  %v1068_v12 = vsel %vm720_vm4, %v1065_v7, %v1067_v1 }
 0x20d   :  { %1323 = vmatprep.mubr.bf16.mxu0 %v1085_v8  ;;  %v3976_v16 = vpack.c.bf16 %v1054_v11, %v1063_v10  ;;  %v3984_v17 = vpack.c.bf16 %v1068_v12, %v1066_v3  ;;  %v1056_v29 = vsel %vm707_vm0, %v1053_v5, %v1055_v24 }
 0x20e   :  { %v1069_v14 = vrot.slane %v1047_v9, 1  ;;  %v1057_v20 = vrot.slane %v1047_v9, 7  ;;  %v1088_v21 = vpack.c.bf16 %v1047_v9, %v1046_v60 }
 0x20f   :  { %3977 = vmatmul.mubr.msk.bf16.vlgmr.msra.gmra.mxu0 %vm5694_vm3, %v3976_v16  ;;  %4726 = vmatprep.mubr.msk.bf16.mxu1 %vm5717_vm7, %v3984_v17 }
 0x210   :  { %v1075_v22 = vsel %vm720_vm4, %v1069_v14, 0.0  ;;  %v1070_v23 = vsel %vm720_vm4, %v1067_v1, %v1069_v14  ;;  %1331 = vmatprep.mubr.bf16.mxu0 %v1088_v21  ;;  %4419 = vmatpush3.bf16.msra.mxu0 %v4849_v13  ;;  %v1058_v28 = vsel %vm707_vm0, %v1055_v24, %v1057_v20 }
 0x211   :  { %v3988_v25 = vpack.c.bf16 %v1075_v22, %v1070_v23  ;;  %4420 = vmatprep.subr.bf16.mxu0 %v4850_v18  ;;  %v3980_v33 = vpack.c.bf16 %v1058_v28, %v1056_v29 }
 0x213   :  { %4727 = vmatmul.mubr.msk.bf16.vlgmr.msra.gmra.mxu1 %vm5743_vm10, %v3988_v25 }
 0x214   :  { %4731 = vmatpush3.bf16.msra.mxu1 %v5815_v31  ;;  %4421 = vmatpush3.bf16.msra.mxu0 %v4851_v26  ;;  %v4856_v31 = vld [vmem:[%s6170_s3 + $0x230] sm:$0xff]  }
 0x215   :  { %4422 = vmatprep.subr.bf16.mxu0 %v4852_v27  ;;  %4732 = vmatprep.subr.bf16.mxu1 %v4856_v31 }
 0x217   :  { %3981 = vmatmul.mubr.msk.bf16.gmra.mxu0 %vm5734_vm9, %v3980_v33  ;;  %v4873_v33 = vld [vmem:[%s6170_s3 + $0x278] sm:$0xff]  }
 0x218   :  { %4423 = vmatpush3.bf16.msra.mxu0 %v4854_v32  ;;  %4733 = vmatpush3.bf16.msra.mxu1 %v4856_v31 }
 0x219   :  { %4424 = vmatprep.subr.bf16.mxu0 %v4855_v34  ;;  %4734 = vmatprep.subr.bf16.mxu1 %v4859_v37  ;;  %v4874_v34 = vld [vmem:[%s6170_s3 + $0x2b0] sm:$0xff]  }
 0x21c   :  { %4425 = vmatpush3.bf16.msra.mxu0 %v4857_v35  ;;  %4735 = vmatpush3.bf16.msra.mxu1 %v4859_v37 }
 0x21d   :  { %4426 = vmatprep.subr.bf16.mxu0 %v4858_v36  ;;  %4736 = vmatprep.subr.bf16.mxu1 %v4862_v40 }
 0x220   :  { %4427 = vmatpush3.bf16.msra.mxu0 %v4860_v38  ;;  %4737 = vmatpush3.bf16.msra.mxu1 %v4862_v40 }
 0x221   :  { %4428 = vmatprep.subr.bf16.mxu0 %v4861_v39  ;;  %4738 = vmatprep.subr.bf16.mxu1 %v4865_v44 }
 0x224   :  { %4429 = vmatpush3.bf16.msra.mxu0 %v4863_v41  ;;  %4739 = vmatpush3.bf16.msra.mxu1 %v4865_v44  ;;  %v4876_v41 = vld [vmem:[%s6170_s3 + $0x270] sm:$0xff]  }
 0x225   :  { %4430 = vmatprep.subr.bf16.mxu0 %v4864_v42  ;;  %4740 = vmatprep.subr.bf16.mxu1 %v4868_v48 }
 0x228   :  { %4431 = vmatpush3.bf16.msra.mxu0 %v4866_v46  ;;  %4741 = vmatpush3.bf16.msra.mxu1 %v4868_v48 }
 0x229   :  { %4432 = vmatprep.subr.bf16.mxu0 %v4867_v47  ;;  %4742 = vmatprep.subr.bf16.mxu1 %v4870_v50 }
 0x22c   :  { %4433 = vmatpush3.bf16.msra.mxu0 %v4869_v49  ;;  %4743 = vmatpush3.bf16.msra.mxu1 %v4870_v50 }
 0x22d   :  { %4744 = vmatprep.subr.bf16.mxu1 %v4871_v51  ;;  %4456 = vmatprep.subr.bf16.mxu0 %v4872_v52 }
 0x230   :  { %4745 = vmatpush3.bf16.msra.mxu1 %v4871_v51 }
 0x231   :  { %4750 = vmatprep.subr.bf16.mxu1 %v5910_v53 }
 0x2cf   :  { %v4396_v55 = vpop.f32.mrf.mxu0 }
 0x2d1   :  { %v4397_v56 = vpop.f32.mrf.mxu0 }
 0x2d2   :  { %v4398_v59 = vadd.f32 %v4397_v56, %v4396_v55  ;;  %v4877_v55 = vld [vmem:[%s6170_s3 + $0x2a8] sm:$0xff]   ;;  %v4878_v56 = vld [vmem:[%s6170_s3 + $0x2f0] sm:$0xff]  }
 0x2d3   :  { %v4728_v60 = vpop.f32.mrf.mxu1  ;;  %v4399_v61 = vpop.f32.mrf.mxu0 }
 0x2d4   :  { %v1326_v62 = vadd.f32 %v4398_v59, %v3949_v58  ;;  %v4881_v59 = vld [vmem:[%s6170_s3 + $0x2e8] sm:$0xff]  }
 0x2d5   :  { %v1374_v63 = vpop.f32.mrf.mxu1  ;;  %v4400_v1 = vpop.f32.mrf.mxu0 }
 0x2d6   :  { %v4401_v2 = vadd.f32 %v4400_v1, %v4399_v61  ;;  %v1375_v4 = vadd.f32 %v1374_v63, %v1326_v62  ;;  %v4883_v61 = vld [vmem:[%s6170_s3 + $0x298] sm:$0xff]   ;;  %v4884_v62 = vld [vmem:[%s6170_s3 + $0x2e0] sm:$0xff]   ;;  %v4886_v1 = vld [vmem:[%s6170_s3 + $0x290] sm:$0xff]  }
 0x2d7   :  { %v4729_v5 = vpop.f32.mrf.mxu1  ;;  %v4402_v7 = vpop.f32.mrf.mxu0  ;;  %v4885_v63 = vld [vmem:[%s6170_s3 + $0x258] sm:$0xff]  }
 0x2d8   :  { %v1389_v8 = vadd.f32 %v1375_v4, %v5676_v19  ;;  %v1329_v9 = vadd.f32 %v4401_v2, %v3949_v58  ;;  %v4887_v2 = vld [vmem:[%s6170_s3 + $0x2d8] sm:$0xff]   ;;  %v4888_v4 = vld [vmem:[%s6170_s3 + $0x250] sm:$0xff]  }
 0x2d9   :  { %v1377_v10 = vpop.f32.mrf.mxu1  ;;  %v4403_v11 = vpop.f32.mrf.mxu0 }
 0x2da   :  { %v5917_v3 = vmax.f32 %v1389_v8, 0.0  ;;  %v4404_v12 = vadd.f32 %v4403_v11, %v4402_v7  ;;  %v1378_v13 = vadd.f32 %v1377_v10, %v1329_v9  ;;  %v4890_v7 = vld [vmem:[%s6170_s3 + $0x2d0] sm:$0xff]   ;;  %v4891_v8 = vld [vmem:[%s6170_s3 + $0x248] sm:$0xff]   ;;  %v4892_v9 = vld [vmem:[%s6170_s3 + $0x280] sm:$0xff]  }
 0x2db   :  { %v4405_v14 = vpop.f32.mrf.mxu0  ;;  %v4893_v10 = vld [vmem:[%s6170_s3 + $0x2c8] sm:$0xff]   ;;  %v4894_v11 = vld [vmem:[%s6170_s3 + $0x240] sm:$0xff]  }
 0x2dc   :  { %v1334_v16 = vadd.f32 %v4404_v12, %v3949_v58  ;;  %v1390_v17 = vadd.f32 %v1378_v13, %v5682_v30  ;;  %v1401_v18 = vrot.slane %v5917_v3, 7  ;;  %v1413_v31 = vrot.slane %v5917_v3, 1  ;;  %v4895_v12 = vld [vmem:[%s6170_s3 + $0x2c0] sm:$0xff]  }
 0x2dd   :  { %v4406_v20 = vpop.f32.mrf.mxu0 }
 0x2de   :  { %v1383_v21 = vadd.f32 %v4728_v60, %v1334_v16  ;;  %v5921_v22 = vmax.f32 %v1390_v17, 0.0  ;;  %v4407_v23 = vadd.f32 %v4406_v20, %v4405_v14  ;;  %v1412_v26 = vsel %vm707_vm0, 0.0, %v1401_v18  ;;  %v4882_v60 = vld [vmem:[%s6170_s3 + $0x260] sm:$0xff]  }
 0x2df   :  { %v4039_v20 = vld [vmem:[%s6171_s4 + $0x2] ss:$0 sm:$0xff] }
 0x2e0   :  { %v1391_v19 = vadd.f32 %v1383_v21, %v5691_v43  ;;  %v1402_v24 = vrot.slane %v5921_v22, 7  ;;  %v1337_v25 = vadd.f32 %v4407_v23, %v3949_v58  ;;  %v1434_v27 = vpack.c.bf16 %v5921_v22, %v5917_v3  ;;  %v4879_v58 = vld [vmem:[%s6170_s3 + $0x268] sm:$0xff]  }
 0x2e1   :  { %v1414_v29 = vrot.slane %v5921_v22, 1 }
 0x2e2   :  { %v5928_v28 = vmax.f32 %v1391_v19, 0.0  ;;  %v1403_v30 = vsel %vm707_vm0, %v1401_v18, %v1402_v24  ;;  %v1386_v32 = vadd.f32 %v4729_v5, %v1337_v25  ;;  %1672 = vmatprep.mubr.bf16.mxu0 %v1434_v27  ;;  %v4889_v5 = vld [vmem:[%s6170_s3 + $0x288] sm:$0xff]  }
 0x2e3   :  { %v4066_v43 = vpack.c.bf16 %v1403_v30, %v1412_v26  ;;  %v1415_v38 = vsel %vm720_vm4, %v1413_v31, %v1414_v29 }
 0x2e4   :  { %v1392_v35 = vadd.f32 %v1386_v32, %v5712_v54  ;;  %v1416_v36 = vrot.slane %v5928_v28, 1  ;;  %v1404_v40 = vrot.slane %v5928_v28, 7 }
 0x2e5   :  { %4067 = vmatmul.mubr.msk.bf16.vlgmr.msra.gmra.mxu0 %vm5694_vm3, %v4066_v43 }
 0x2e6   :  { %v5943_v37 = vmax.f32 %v1392_v35, 0.0  ;;  %v1417_v39 = vsel %vm720_vm4, %v1414_v29, %v1416_v36  ;;  %4457 = vmatpush3.bf16.msra.mxu0 %v4873_v33  ;;  %v1405_v47 = vsel %vm707_vm0, %v1402_v24, %v1404_v40 }
 0x2e7   :  { %v4074_v42 = vpack.c.bf16 %v1417_v39, %v1415_v38  ;;  %4458 = vmatprep.subr.bf16.mxu0 %v4874_v34 }
 0x2e8   :  { %v1437_v54 = vpack.c.bf16 %v5943_v37, %v5928_v28  ;;  %v1406_v44 = vrot.slane %v5943_v37, 7  ;;  %v1418_v46 = vrot.slane %v5943_v37, 1 }
 0x2e9   :  { %4746 = vmatprep.mubr.msk.bf16.mxu1 %vm5717_vm7, %v4074_v42 }
 0x2ea   :  { %1680 = vmatprep.mubr.bf16.mxu0 %v1437_v54  ;;  %v1407_v48 = vsel %vm707_vm0, %v1404_v40, %v1406_v44  ;;  %v1419_v49 = vsel %vm720_vm4, %v1416_v36, %v1418_v46  ;;  %v1424_v50 = vsel %vm720_vm4, %v1418_v46, 0.0  ;;  %4459 = vmatpush3.bf16.msra.mxu0 %v4876_v41 }
 0x2eb   :  { %v4070_v51 = vpack.c.bf16 %v1407_v48, %v1405_v47  ;;  %v4078_v52 = vpack.c.bf16 %v1424_v50, %v1419_v49  ;;  %4460 = vmatprep.subr.bf16.mxu0 %v4877_v55 }
 0x2ed   :  { %4071 = vmatmul.mubr.msk.bf16.gmra.mxu0 %vm5734_vm9, %v4070_v51  ;;  %4747 = vmatmul.mubr.msk.bf16.vlgmr.msra.gmra.mxu1 %vm5743_vm10, %v4078_v52 }
 0x2ee   :  { %4751 = vmatpush3.bf16.msra.mxu1 %v5910_v53  ;;  %4461 = vmatpush3.bf16.msra.mxu0 %v4879_v58  ;;  %v4880_v53 = vld [vmem:[%s6170_s3 + $0x2a0] sm:$0xff]  }
 0x2ef   :  { %4752 = vmatprep.subr.bf16.mxu1 %v4878_v56  ;;  %4462 = vmatprep.subr.bf16.mxu0 %v4880_v53 }
 0x2f2   :  { %4753 = vmatpush3.bf16.msra.mxu1 %v4878_v56  ;;  %4463 = vmatpush3.bf16.msra.mxu0 %v4882_v60 }
 0x2f3   :  { %4754 = vmatprep.subr.bf16.mxu1 %v4881_v59  ;;  %4464 = vmatprep.subr.bf16.mxu0 %v4883_v61 }
 0x2f6   :  { %4755 = vmatpush3.bf16.msra.mxu1 %v4881_v59  ;;  %4465 = vmatpush3.bf16.msra.mxu0 %v4885_v63 }
 0x2f7   :  { %4756 = vmatprep.subr.bf16.mxu1 %v4884_v62  ;;  %4466 = vmatprep.subr.bf16.mxu0 %v4886_v1 }
 0x2fa   :  { %4757 = vmatpush3.bf16.msra.mxu1 %v4884_v62  ;;  %4467 = vmatpush3.bf16.msra.mxu0 %v4888_v4 }
 0x2fb   :  { %4758 = vmatprep.subr.bf16.mxu1 %v4887_v2  ;;  %4468 = vmatprep.subr.bf16.mxu0 %v4889_v5 }
 0x2fe   :  { %4759 = vmatpush3.bf16.msra.mxu1 %v4887_v2  ;;  %4469 = vmatpush3.bf16.msra.mxu0 %v4891_v8 }
 0x2ff   :  { %4760 = vmatprep.subr.bf16.mxu1 %v4890_v7  ;;  %4470 = vmatprep.subr.bf16.mxu0 %v4892_v9  ;;  %v5053_v9 = vmov 1983009808  }
 0x300   :  { %v2094_v57 = vunpack.c.l.s4 %v5053_v9 }
 0x302   :  { %4761 = vmatpush3.bf16.msra.mxu1 %v4890_v7  ;;  %4471 = vmatpush3.bf16.msra.mxu0 %v4894_v11  ;;  %v4129_v11 = vld [vmem:[%s6171_s4 + $0x3] ss:$0 sm:$0xff] }
 0x303   :  { %4762 = vmatprep.subr.bf16.mxu1 %v4893_v10 }
 0x306   :  { %4763 = vmatpush3.bf16.msra.mxu1 %v4893_v10 }
 0x307   :  { %4764 = vmatprep.subr.bf16.mxu1 %v4895_v12 }
 0x30a   :  { %4765 = vmatpush3.bf16.msra.mxu1 %v4895_v12 }
 0x3a5   :  { %v4434_v13 = vpop.f32.mrf.mxu0 }
 0x3a7   :  { %v4435_v14 = vpop.f32.mrf.mxu0 }
 0x3a8   :  { %v4436_v17 = vadd.f32 %v4435_v14, %v4434_v13  ;;  %v2095_v14 = vunpack.c.0.s8 %v2094_v57 }
 0x3a9   :  { %v4437_v16 = vpop.f32.mrf.mxu0 }
 0x3aa   :  { %v1675_v19 = vadd.f32 %v4436_v17, %v4039_v20 }
 0x3ab   :  { %v4438_v18 = vpop.f32.mrf.mxu0 }
 0x3ac   :  { %v4439_v24 = vadd.f32 %v4438_v18, %v4437_v16 }
 0x3ad   :  { %v4440_v21 = vpop.f32.mrf.mxu0  ;;  %v4748_v23 = vpop.f32.mrf.mxu1 }
 0x3ae   :  { %v1678_v31 = vadd.f32 %v4439_v24, %v4039_v20 }
 0x3af   :  { %v4441_v25 = vpop.f32.mrf.mxu0  ;;  %v1723_v26 = vpop.f32.mrf.mxu1 }
 0x3b0   :  { %v4442_v27 = vadd.f32 %v4441_v25, %v4440_v21  ;;  %v1724_v30 = vadd.f32 %v1723_v26, %v1675_v19  ;;  %v6046_v19 = vsub.s32 %v2095_v14, %v5674_v15 }
 0x3b1   :  { %v4443_v29 = vpop.f32.mrf.mxu0  ;;  %v4749_v32 = vpop.f32.mrf.mxu1 }
 0x3b2   :  { %v1683_v33 = vadd.f32 %v4442_v27, %v4039_v20  ;;  %v1738_v43 = vmax.f32 %v1724_v30, 0.0 }
 0x3b3   :  { %v4444_v34 = vpop.f32.mrf.mxu0  ;;  %v1726_v35 = vpop.f32.mrf.mxu1 }
 0x3b4   :  { %v1732_v36 = vadd.f32 %v4748_v23, %v1683_v33  ;;  %v4445_v38 = vadd.f32 %v4444_v34, %v4443_v29  ;;  %v1727_v39 = vadd.f32 %v1726_v35, %v1678_v31  ;;  %v1746_v42 = vrot.slane %v1738_v43, 7 }
 0x3b5   :  { %v1758_v47 = vrot.slane %v1738_v43, 1 }
 0x3b6   :  { %v1740_v40 = vmax.f32 %v1732_v36, 0.0  ;;  %v1686_v41 = vadd.f32 %v4445_v38, %v4039_v20  ;;  %v1739_v54 = vmax.f32 %v1727_v39, 0.0  ;;  %v1757_v52 = vsel %vm707_vm0, 0.0, %v1746_v42 }
 0x3b8   :  { %v1761_v44 = vrot.slane %v1740_v40, 1  ;;  %v1735_v46 = vadd.f32 %v4749_v32, %v1686_v41  ;;  %v1747_v48 = vrot.slane %v1739_v54, 7  ;;  %v1759_v49 = vrot.slane %v1739_v54, 1 }
 0x3b9   :  { %v1779_v50 = vpack.c.bf16 %v1739_v54, %v1738_v43  ;;  %v1749_v2 = vrot.slane %v1740_v40, 7 }
 0x3ba   :  { %v1741_v51 = vmax.f32 %v1735_v46, 0.0  ;;  %v1748_v55 = vsel %vm707_vm0, %v1746_v42, %v1747_v48  ;;  %v1760_v56 = vsel %vm720_vm4, %v1758_v47, %v1759_v49  ;;  %v1762_v58 = vsel %vm720_vm4, %v1759_v49, %v1761_v44 }
 0x3bb   :  { %2017 = vmatprep.mubr.bf16.mxu0 %v1779_v50  ;;  %v4156_v59 = vpack.c.bf16 %v1748_v55, %v1757_v52  ;;  %v4164_v60 = vpack.c.bf16 %v1762_v58, %v1760_v56  ;;  %v1750_v7 = vsel %vm707_vm0, %v1747_v48, %v1749_v2 }
 0x3bc   :  { %v1763_v53 = vrot.slane %v1741_v51, 1  ;;  %v1751_v61 = vrot.slane %v1741_v51, 7  ;;  %v1782_v62 = vpack.c.bf16 %v1741_v51, %v1740_v40 }
 0x3bd   :  { %4157 = vmatmul.mubr.msk.bf16.vlgmr.msra.gmra.mxu0 %vm5694_vm3, %v4156_v59  ;;  %4766 = vmatprep.mubr.msk.bf16.mxu1 %vm5717_vm7, %v4164_v60 }
 0x3be   :  { %v1769_v63 = vsel %vm720_vm4, %v1763_v53, 0.0  ;;  %v1764_v1 = vsel %vm720_vm4, %v1761_v44, %v1763_v53  ;;  %2025 = vmatprep.mubr.bf16.mxu0 %v1782_v62  ;;  %v1752_v5 = vsel %vm707_vm0, %v1749_v2, %v1751_v61 }
 0x3bf   :  { %v4168_v4 = vpack.c.bf16 %v1769_v63, %v1764_v1  ;;  %v4160_v8 = vpack.c.bf16 %v1752_v5, %v1750_v7 }
 0x3c1   :  { %4767 = vmatmul.mubr.msk.bf16.vlgmr.msra.gmra.mxu1 %vm5743_vm10, %v4168_v4 }
 0x3c5   :  { %4161 = vmatmul.mubr.msk.bf16.gmra.mxu0 %vm5734_vm9, %v4160_v8 }
 0x47d   :  { %v4472_v45 = vpop.f32.mrf.mxu0 }
 0x47f   :  { %v4473_v10 = vpop.f32.mrf.mxu0 }
 0x480   :  { %v4474_v12 = vadd.f32 %v4473_v10, %v4472_v45 }
 0x481   :  { %v4768_v13 = vpop.f32.mrf.mxu1  ;;  %v4475_v6 = vpop.f32.mrf.mxu0 }
 0x482   :  { %v2020_v16 = vadd.f32 %v4474_v12, %v4129_v11 }
 0x483   :  { %v2068_v17 = vpop.f32.mrf.mxu1  ;;  %v4476_v18 = vpop.f32.mrf.mxu0 }
 0x484   :  { %v4477_v20 = vadd.f32 %v4476_v18, %v4475_v6  ;;  %v2069_v21 = vadd.f32 %v2068_v17, %v2020_v16 }
 0x485   :  { %v4769_v23 = vpop.f32.mrf.mxu1  ;;  %v4478_v0 = vpop.f32.mrf.mxu0 }
 0x486   :  { %v2083_v24 = vadd.f32 %v2069_v21, %v5917_v3  ;;  %v2023_v25 = vadd.f32 %v4477_v20, %v4129_v11 }
 0x487   :  { %v2071_v26 = vpop.f32.mrf.mxu1  ;;  %v4479_v27 = vpop.f32.mrf.mxu0 }
 0x488   :  { %v2087_v30 = vmax.f32 %v2083_v24, 0.0  ;;  %v4480_v29 = vadd.f32 %v4479_v27, %v4478_v0  ;;  %v2072_v32 = vadd.f32 %v2071_v26, %v2023_v25 }
 0x489   :  { %v4481_v33 = vpop.f32.mrf.mxu0 }
 0x48a   :  { %v2099_v43 = vrot.slane %v2087_v30, %v6046_v19  ;;  %v2151_v34 = vcombine.high %v2087_v30, %v2087_v30  ;;  %v2028_v31 = vadd.f32 %v4480_v29, %v4129_v11  ;;  %v2084_v35 = vadd.f32 %v2072_v32, %v5921_v22 }
 0x48b   :  { %v4482_v36 = vpop.f32.mrf.mxu0 }
 0x48c   :  { %v2158_v38 = vrot.slane %v2151_v34, %v6046_v19  ;;  %v2077_v39 = vadd.f32 %v4768_v13, %v2028_v31  ;;  %v2088_v40 = vmax.f32 %v2084_v35, 0.0  ;;  %v4483_v41 = vadd.f32 %v4482_v36, %v4481_v33 }
 0x48d   :  { %v2131_v3 = vcombine.high %v2099_v43, %v2099_v43  ;;  %v2122_v22 = vrot.slane %v2099_v43, 1 }
 0x48e   :  { %v2085_v42 = vadd.f32 %v2077_v39, %v5928_v28  ;;  %v6053_v54 = vcombine.high %v2158_v38, %v2158_v38  ;;  %v6056_v44 = vrot.slane %v2088_v40, %v6046_v19  ;;  %v2259_v46 = vcombine.high %v2088_v40, %v2088_v40 }
 0x48f   :  { %v2031_v47 = vadd.f32 %v4483_v41, %v4129_v11  ;;  %v2142_v51 = vrot.slane %v2131_v3, 1  ;;  %v2176_v52 = vrot.slane %v2158_v38, 1 }
 0x490   :  { %v2089_v48 = vmax.f32 %v2085_v42, 0.0  ;;  %v6060_v49 = vcombine.high %v6056_v44, %v6056_v44  ;;  %v6063_v50 = vrot.slane %v2259_v46, %v6046_v19  ;;  %v2196_v58 = vrot.slane %v6053_v54, 1 }
 0x491   :  { %v2080_v28 = vadd.f32 %v4769_v23, %v2031_v47  ;;  %v2230_v53 = vrot.slane %v6056_v44, 1 }
 0x492   :  { %v2106_v55 = vrot.slane %v2089_v48, %v6046_v19  ;;  %v2159_v56 = vcombine.high %v2089_v48, %v2089_v48  ;;  %v2250_v59 = vrot.slane %v6060_v49, 1  ;;  %v2284_v4 = vrot.slane %v6063_v50, 1 }
 0x493   :  { %v2086_v60 = vadd.f32 %v2080_v28, %v5943_v37  ;;  %v6076_v5 = vcombine.high %v6063_v50, %v6063_v50 }
 0x494   :  { %v2111_v61 = vrot.slane %v2106_v55, 7  ;;  %v2125_v62 = vsel %vm2112_vm11, %v2106_v55, %v2122_v22  ;;  %v2132_v63 = vcombine.high %v2106_v55, %v2106_v55  ;;  %v2166_v1 = vrot.slane %v2159_v56, %v6046_v19 }
 0x495   :  { %v2126_v2 = vsel %vm2114_vm12, %v2106_v55, %v2125_v62  ;;  %v2090_v7 = vmax.f32 %v2086_v60, 0.0 }
 0x496   :  { %v2113_v8 = vsel %vm2112_vm11, %v2111_v61, %v2099_v43  ;;  %v2127_v45 = vsel %vm2116_vm13, %v2106_v55, %v2126_v2  ;;  %v2135_v37 = vrot.slane %v2132_v63, 7  ;;  %v2145_v9 = vsel %vm2112_vm11, %v2132_v63, %v2142_v51 }
 0x497   :  { %v2115_v57 = vsel %vm2114_vm12, %v2111_v61, %v2113_v8  ;;  %v2128_v10 = vsel %vm2118_vm14, %v2106_v55, %v2127_v45  ;;  %v2146_v11 = vsel %vm2114_vm12, %v2132_v63, %v2145_v9  ;;  %v2169_v12 = vrot.slane %v2166_v1, 7 }
 0x498   :  { %v2117_v13 = vsel %vm2116_vm13, %v2111_v61, %v2115_v57  ;;  %2130 = vst [vmem:[#allocation3 + $0x2] sm:$0x3] %v2128_v10  ;;  %v2136_v6 = vsel %vm2112_vm11, %v2135_v37, %v2131_v3  ;;  %v2147_v14 = vsel %vm2116_vm13, %v2132_v63, %v2146_v11  ;;  %v2179_v16 = vsel %vm2112_vm11, %v2166_v1, %v2176_v52 }
 0x499   :  { %v2119_v17 = vsel %vm2118_vm14, %v2111_v61, %v2117_v13  ;;  %v2137_v18 = vsel %vm2114_vm12, %v2135_v37, %v2136_v6  ;;  %v2148_v20 = vsel %vm2118_vm14, %v2132_v63, %v2147_v14  ;;  %v2170_v21 = vsel %vm2112_vm11, %v2169_v12, %v2158_v38 }
 0x49a   :  { %2121 = vst [vmem:[#allocation3] sm:$0x3] %v2119_v17  ;;  %v2138_v23 = vsel %vm2116_vm13, %v2135_v37, %v2137_v18  ;;  %2150 = vst [vmem:[#allocation3 + $0x6] sm:$0x3] %v2148_v20  ;;  %v2171_v0 = vsel %vm2114_vm12, %v2169_v12, %v2170_v21  ;;  %v2180_v24 = vsel %vm2114_vm12, %v2166_v1, %v2179_v16 }
 0x49b   :  { %v2186_v25 = vcombine.high %v2166_v1, %v2166_v1  ;;  %v2139_v26 = vsel %vm2118_vm14, %v2135_v37, %v2138_v23  ;;  %v2172_v27 = vsel %vm2116_vm13, %v2169_v12, %v2171_v0  ;;  %v2181_v30 = vsel %vm2116_vm13, %v2166_v1, %v2180_v24 }
 0x49c   :  { %v2220_v29 = vrot.slane %v2090_v7, %v6046_v19  ;;  %2141 = vst [vmem:[#allocation3 + $0x4] sm:$0x3] %v2139_v26  ;;  %v2173_v32 = vsel %vm2118_vm14, %v2169_v12, %v2172_v27  ;;  %v2182_v33 = vsel %vm2118_vm14, %v2166_v1, %v2181_v30  ;;  %v2267_v3 = vcombine.high %v2090_v7, %v2090_v7 }
 0x49d   :  { %v2189_v43 = vrot.slane %v2186_v25, 7  ;;  %v2199_v34 = vsel %vm2112_vm11, %v2186_v25, %v2196_v58  ;;  %2175 = vst [vmem:[#allocation3 + $0x8] sm:$0x3] %v2173_v32  ;;  %2184 = vst [vmem:[#allocation3 + $0xa] sm:$0x3] %v2182_v33  ;;  %v2304_v58 = vrot.slane %v6076_v5, 1 }
 0x49e   :  { %v2200_v31 = vsel %vm2114_vm12, %v2186_v25, %v2199_v34  ;;  %v2223_v35 = vrot.slane %v2220_v29, 7  ;;  %v2233_v36 = vsel %vm2112_vm11, %v2220_v29, %v2230_v53  ;;  %v2240_v38 = vcombine.high %v2220_v29, %v2220_v29 }
 0x49f   :  { %v2190_v39 = vsel %vm2112_vm11, %v2189_v43, %v6053_v54  ;;  %v2201_v40 = vsel %vm2116_vm13, %v2186_v25, %v2200_v31  ;;  %v2234_v41 = vsel %vm2114_vm12, %v2220_v29, %v2233_v36 }
 0x4a0   :  { %v2191_v42 = vsel %vm2114_vm12, %v2189_v43, %v2190_v39  ;;  %v2202_v46 = vsel %vm2118_vm14, %v2186_v25, %v2201_v40  ;;  %v2224_v47 = vsel %vm2112_vm11, %v2223_v35, %v6056_v44  ;;  %v2235_v48 = vsel %vm2116_vm13, %v2220_v29, %v2234_v41 }
 0x4a1   :  { %v2192_v22 = vsel %vm2116_vm13, %v2189_v43, %v2191_v42  ;;  %2204 = vst [vmem:[#allocation3 + $0xe] sm:$0x3] %v2202_v46  ;;  %v2225_v28 = vsel %vm2114_vm12, %v2223_v35, %v2224_v47  ;;  %v2236_v54 = vsel %vm2118_vm14, %v2220_v29, %v2235_v48  ;;  %v2243_v51 = vrot.slane %v2240_v38, 7 }
 0x4a2   :  { %v2193_v52 = vsel %vm2118_vm14, %v2189_v43, %v2192_v22  ;;  %v2226_v55 = vsel %vm2116_vm13, %v2223_v35, %v2225_v28  ;;  %2238 = vst [vmem:[#allocation3 + $0x12] sm:$0x3] %v2236_v54  ;;  %v2253_v56 = vsel %vm2112_vm11, %v2240_v38, %v2250_v59  ;;  %v2274_v44 = vrot.slane %v2267_v3, %v6046_v19 }
 0x4a3   :  { %2195 = vst [vmem:[#allocation3 + $0xc] sm:$0x3] %v2193_v52  ;;  %v2227_v53 = vsel %vm2118_vm14, %v2223_v35, %v2226_v55  ;;  %v2244_v60 = vsel %vm2112_vm11, %v2243_v51, %v6060_v49  ;;  %v2254_v61 = vsel %vm2114_vm12, %v2240_v38, %v2253_v56 }
 0x4a4   :  { %2229 = vst [vmem:[#allocation3 + $0x10] sm:$0x3] %v2227_v53  ;;  %v2245_v62 = vsel %vm2114_vm12, %v2243_v51, %v2244_v60  ;;  %v2255_v63 = vsel %vm2116_vm13, %v2240_v38, %v2254_v61  ;;  %v2277_v1 = vrot.slane %v2274_v44, 7  ;;  %v2287_v59 = vsel %vm2112_vm11, %v2274_v44, %v2284_v4 }
 0x4a5   :  { %v2246_v2 = vsel %vm2116_vm13, %v2243_v51, %v2245_v62  ;;  %v2256_v7 = vsel %vm2118_vm14, %v2240_v38, %v2255_v63  ;;  %v2288_v8 = vsel %vm2114_vm12, %v2274_v44, %v2287_v59  ;;  %v2294_v45 = vcombine.high %v2274_v44, %v2274_v44 }
 0x4a6   :  { %v2247_v49 = vsel %vm2118_vm14, %v2243_v51, %v2246_v2  ;;  %2258 = vst [vmem:[#allocation3 + $0x16] sm:$0x3] %v2256_v7  ;;  %v2278_v37 = vsel %vm2112_vm11, %v2277_v1, %v6063_v50  ;;  %v2289_v9 = vsel %vm2116_vm13, %v2274_v44, %v2288_v8 }
 0x4a7   :  { %2249 = vst [vmem:[#allocation3 + $0x14] sm:$0x3] %v2247_v49  ;;  %v2279_v57 = vsel %vm2114_vm12, %v2277_v1, %v2278_v37  ;;  %v2290_v4 = vsel %vm2118_vm14, %v2274_v44, %v2289_v9  ;;  %v2297_v10 = vrot.slane %v2294_v45, 7  ;;  %v2307_v11 = vsel %vm2112_vm11, %v2294_v45, %v2304_v58 }
 0x4a8   :  { %v2280_v12 = vsel %vm2116_vm13, %v2277_v1, %v2279_v57  ;;  %2292 = vst [vmem:[#allocation3 + $0x1a] sm:$0x3] %v2290_v4  ;;  %v2308_v13 = vsel %vm2114_vm12, %v2294_v45, %v2307_v11 }
 0x4a9   :  { %v2281_v6 = vsel %vm2118_vm14, %v2277_v1, %v2280_v12  ;;  %v2298_v50 = vsel %vm2112_vm11, %v2297_v10, %v6076_v5  ;;  %v2309_v14 = vsel %vm2116_vm13, %v2294_v45, %v2308_v13 }
 0x4aa   :  { %2283 = vst [vmem:[#allocation3 + $0x18] sm:$0x3] %v2281_v6  ;;  %v2299_v16 = vsel %vm2114_vm12, %v2297_v10, %v2298_v50  ;;  %v2310_v17 = vsel %vm2118_vm14, %v2294_v45, %v2309_v14 }
 0x4ab   :  { %v2300_v18 = vsel %vm2116_vm13, %v2297_v10, %v2299_v16  ;;  %2312 = vst [vmem:[#allocation3 + $0x1e] sm:$0x3] %v2310_v17 }
 0x4ac   :  { %v2301_v20 = vsel %vm2118_vm14, %v2297_v10, %v2300_v18 }
 0x4ad   :  { %2303 = vst [vmem:[#allocation3 + $0x1c] sm:$0x3] %v2301_v20 }
 0x4ae   :  { %5048 = dma.done.wait [#allocation4], 16384 }
 0x4af   :  { %5049 = vsyncadd [#allocation4], 4294950912  ;;  %v4896_v21 = vld [vmem:[#allocation2 + $0x78] sm:$0xff]   ;;  %v4900_v24 = vld [vmem:[#allocation2 + $0x70] sm:$0xff]   ;;  %vm3801_vm15 = vcmask 253952  }
 0x4b0   :  { %v4897_v23 = vld [vmem:[#allocation2 + $0xf8] sm:$0xff]   ;;  %4494 = vmatprep.subr.bf16.mxu0 %v4896_v21  ;;  %v4901_v25 = vld [vmem:[#allocation2 + $0xf0] sm:$0xff]   ;;  %v4904_v30 = vld [vmem:[#allocation2 + $0x68] sm:$0xff]  }
 0x4b1   :  { %v4898_v0 = vld [vmem:[#allocation2 + $0x38] sm:$0xff]   ;;  %4516 = vmatprep.subr.bf16.mxu1 %v4897_v23  ;;  %v4902_v26 = vld [vmem:[#allocation2 + $0x30] sm:$0xff]   ;;  %v4905_v29 = vld [vmem:[#allocation2 + $0xe8] sm:$0xff]  }
 0x4b2   :  { %v4899_v5 = vld [vmem:[#allocation2 + $0xb8] sm:$0xff]   ;;  %4495 = vmatpush3.bf16.msra.mxu0 %v4898_v0  ;;  %v4903_v27 = vld [vmem:[#allocation2 + $0xb0] sm:$0xff]   ;;  %v4906_v32 = vld [vmem:[#allocation2 + $0x28] sm:$0xff]  }
 0x4b3   :  { %4517 = vmatpush3.bf16.msra.mxu1 %v4899_v5  ;;  %4496 = vmatprep.subr.bf16.mxu0 %v4900_v24  ;;  %v4907_v33 = vld [vmem:[#allocation2 + $0xa8] sm:$0xff]   ;;  %v4908_v43 = vld [vmem:[#allocation2 + $0x60] sm:$0xff]   ;;  %v4912_v36 = vld [vmem:[#allocation2 + $0x58] sm:$0xff]  }
 0x4b4   :  { %4518 = vmatprep.subr.bf16.mxu1 %v4901_v25  ;;  %v4909_v34 = vld [vmem:[#allocation2 + $0xe0] sm:$0xff]   ;;  %v4913_v38 = vld [vmem:[#allocation2 + $0xd8] sm:$0xff]   ;;  %v4916_v41 = vld [vmem:[#allocation2 + $0x50] sm:$0xff]  }
 0x4b5   :  { %v4910_v31 = vld [vmem:[#allocation2 + $0x20] sm:$0xff]   ;;  %v4914_v39 = vld [vmem:[#allocation2 + $0x18] sm:$0xff]   ;;  %v4917_v3 = vld [vmem:[#allocation2 + $0xd0] sm:$0xff]  }
 0x4b6   :  { %4497 = vmatpush3.bf16.msra.mxu0 %v4902_v26  ;;  %v4911_v35 = vld [vmem:[#allocation2 + $0xa0] sm:$0xff]   ;;  %v4915_v40 = vld [vmem:[#allocation2 + $0x98] sm:$0xff]   ;;  %v4918_v42 = vld [vmem:[#allocation2 + $0x10] sm:$0xff]  }
 0x4b7   :  { %4519 = vmatpush3.bf16.msra.mxu1 %v4903_v27  ;;  %4498 = vmatprep.subr.bf16.mxu0 %v4904_v30  ;;  %v4919_v46 = vld [vmem:[#allocation2 + $0x90] sm:$0xff]   ;;  %v4920_v47 = vld [vmem:[#allocation2 + $0x48] sm:$0xff]   ;;  %v4924_v54 = vld [vmem:[#allocation2 + $0x40] sm:$0xff]  }
 0x4b8   :  { %4520 = vmatprep.subr.bf16.mxu1 %v4905_v29  ;;  %v4921_v48 = vld [vmem:[#allocation2 + $0xc8] sm:$0xff]   ;;  %v4925_v51 = vld [vmem:[#allocation2 + $0xc0] sm:$0xff]   ;;  %v4929_v53 = vld [vmem:[#allocation2 + $0x178] sm:$0xff]  }
 0x4b9   :  { %v4922_v22 = vld [vmem:[#allocation2 + $0x8] sm:$0xff]   ;;  %v4926_v52 = vld [vmem:[#allocation2] sm:$0xff]   ;;  %v4930_v60 = vld [vmem:[#allocation2 + $0x1f8] sm:$0xff]  }
 0x4ba   :  { %4499 = vmatpush3.bf16.msra.mxu0 %v4906_v32  ;;  %v4923_v28 = vld [vmem:[#allocation2 + $0x88] sm:$0xff]   ;;  %v4927_v55 = vld [vmem:[#allocation2 + $0x80] sm:$0xff]   ;;  %v4931_v2 = vld [vmem:[#allocation2 + $0x138] sm:$0xff]  }
 0x4bb   :  { %4521 = vmatpush3.bf16.msra.mxu1 %v4907_v33  ;;  %4500 = vmatprep.subr.bf16.mxu0 %v4908_v43  ;;  %v2317_v56 = vld [vmem:[#allocation3] sm:$0xff]  ;;  %v4933_v8 = vld [vmem:[#allocation2 + $0x170] sm:$0xff]   ;;  %v4932_v49 = vld [vmem:[#allocation2 + $0x1b8] sm:$0xff]  }
 0x4bc   :  { %4522 = vmatprep.subr.bf16.mxu1 %v4909_v34  ;;  %v2332_v44 = vrot.slane %v2317_v56, %v6046_v19  ;;  %v2325_v58 = vcombine.high %v2317_v56, %v2317_v56  ;;  %v4934_v37 = vld [vmem:[#allocation2 + $0x1f0] sm:$0xff]   ;;  %v4937_v57 = vld [vmem:[#allocation2 + $0x168] sm:$0xff]   ;;  %v4941_v12 = vld [vmem:[#allocation2 + $0x160] sm:$0xff]  }
 0x4bd   :  { %v4935_v9 = vld [vmem:[#allocation2 + $0x130] sm:$0xff]   ;;  %v4938_v10 = vld [vmem:[#allocation2 + $0x1e8] sm:$0xff]   ;;  %v4942_v6 = vld [vmem:[#allocation2 + $0x1e0] sm:$0xff]  }
 0x4be   :  { %4501 = vmatpush3.bf16.msra.mxu0 %v4910_v31  ;;  %v2340_v61 = vcombine.high %v2332_v44, %v2332_v44  ;;  %v2339_v62 = vrot.slane %v2325_v58, %v6046_v19  ;;  %v2409_v63 = vpack.c.bf16 %v2332_v44, %v2332_v44  ;;  %v4936_v4 = vld [vmem:[#allocation2 + $0x1b0] sm:$0xff]   ;;  %v4939_v11 = vld [vmem:[#allocation2 + $0x128] sm:$0xff]   ;;  %v4943_v50 = vld [vmem:[#allocation2 + $0x120] sm:$0xff]  }
 0x4bf   :  { %4523 = vmatpush3.bf16.msra.mxu1 %v4911_v35  ;;  %4502 = vmatprep.subr.bf16.mxu0 %v4912_v36  ;;  %v4940_v13 = vld [vmem:[#allocation2 + $0x1a8] sm:$0xff]   ;;  %v4945_v14 = vld [vmem:[#allocation2 + $0x158] sm:$0xff]   ;;  %v4944_v16 = vld [vmem:[#allocation2 + $0x1a0] sm:$0xff]  }
 0x4c0   :  { %4524 = vmatprep.subr.bf16.mxu1 %v4913_v38  ;;  %v2410_v1 = vpack.c.bf16 %v2340_v61, %v2340_v61  ;;  %v2341_v59 = vcombine.high %v2339_v62, %v2339_v62  ;;  %v2411_v7 = vpack.c.bf16 %v2339_v62, %v2339_v62  ;;  %v4946_v17 = vld [vmem:[#allocation2 + $0x1d8] sm:$0xff]   ;;  %v4949_v20 = vld [vmem:[#allocation2 + $0x150] sm:$0xff]   ;;  %v4953_v5 = vld [vmem:[#allocation2 + $0x148] sm:$0xff]  }
 0x4c1   :  { %v4947_v18 = vld [vmem:[#allocation2 + $0x118] sm:$0xff]   ;;  %v4950_v23 = vld [vmem:[#allocation2 + $0x1d0] sm:$0xff]   ;;  %v4954_v25 = vld [vmem:[#allocation2 + $0x1c8] sm:$0xff]  }
 0x4c2   :  { %4503 = vmatpush3.bf16.msra.mxu0 %v4914_v39  ;;  %3488 = vmatprep.mubr.bf16.mxu0 %v2410_v1  ;;  %v2412_v45 = vpack.c.bf16 %v2341_v59, %v2341_v59  ;;  %v4948_v21 = vld [vmem:[#allocation2 + $0x198] sm:$0xff]   ;;  %v4951_v0 = vld [vmem:[#allocation2 + $0x110] sm:$0xff]   ;;  %v4955_v26 = vld [vmem:[#allocation2 + $0x108] sm:$0xff]  }
 0x4c3   :  { %4525 = vmatpush3.bf16.msra.mxu1 %v4915_v40  ;;  %4504 = vmatprep.subr.bf16.mxu0 %v4916_v41  ;;  %v4952_v24 = vld [vmem:[#allocation2 + $0x190] sm:$0xff]   ;;  %v4957_v27 = vld [vmem:[#allocation2 + $0x140] sm:$0xff]   ;;  %v4956_v30 = vld [vmem:[#allocation2 + $0x188] sm:$0xff]  }
 0x4c4   :  { %4526 = vmatprep.subr.bf16.mxu1 %v4917_v3  ;;  %3528 = vmatprep.mubr.bf16.mxu1 %v2412_v45  ;;  %v4958_v29 = vld [vmem:[#allocation2 + $0x1c0] sm:$0xff]   ;;  %v2318_v32 = vld [vmem:[#allocation3 + $0x8] sm:$0xff]  ;;  %v4962_v31 = vld [vmem:[#allocation2 + $0x278] sm:$0xff]  }
 0x4c5   :  { %v4959_v33 = vld [vmem:[#allocation2 + $0x100] sm:$0xff]   ;;  %v2349_v43 = vrot.slane %v2318_v32, %v6046_v19  ;;  %v2342_v34 = vcombine.high %v2318_v32, %v2318_v32  ;;  %v4963_v40 = vld [vmem:[#allocation2 + $0x2f8] sm:$0xff]   ;;  %v4972_v56 = vld [vmem:[#allocation2 + $0x228] sm:$0xff]  }
 0x4c6   :  { %4505 = vmatpush3.bf16.msra.mxu0 %v4918_v42  ;;  %v4960_v35 = vld [vmem:[#allocation2 + $0x180] sm:$0xff]   ;;  %v4964_v42 = vld [vmem:[#allocation2 + $0x238] sm:$0xff]   ;;  %v4973_v58 = vld [vmem:[#allocation2 + $0x2a8] sm:$0xff]  }
 0x4c7   :  { %4527 = vmatpush3.bf16.msra.mxu1 %v4919_v46  ;;  %4506 = vmatprep.subr.bf16.mxu0 %v4920_v47  ;;  %v2357_v36 = vcombine.high %v2349_v43, %v2349_v43  ;;  %v2356_v38 = vrot.slane %v2342_v34, %v6046_v19  ;;  %v2413_v39 = vpack.c.bf16 %v2349_v43, %v2349_v43  ;;  %v4966_v47 = vld [vmem:[#allocation2 + $0x270] sm:$0xff]   ;;  %v4974_v44 = vld [vmem:[#allocation2 + $0x260] sm:$0xff]   ;;  %v4978_v61 = vld [vmem:[#allocation2 + $0x258] sm:$0xff]  }
 0x4c8   :  { %4528 = vmatprep.subr.bf16.mxu1 %v4921_v48  ;;  %v4977_v62 = vld [vmem:[#allocation2 + $0x2a0] sm:$0xff]   ;;  %v4980_v1 = vld [vmem:[#allocation2 + $0x218] sm:$0xff]   ;;  %v4982_v59 = vld [vmem:[#allocation2 + $0x250] sm:$0xff]  }
 0x4c9   :  { %v2414_v41 = vpack.c.bf16 %v2357_v36, %v2357_v36  ;;  %v2358_v3 = vcombine.high %v2356_v38, %v2356_v38  ;;  %v2415_v46 = vpack.c.bf16 %v2356_v38, %v2356_v38  ;;  %v4986_v45 = vld [vmem:[#allocation2 + $0x248] sm:$0xff]   ;;  %v5002_v32 = vld [vmem:[#allocation2 + $0x3b0] sm:$0xff]   ;;  %v5007_v34 = vld [vmem:[#allocation2 + $0x360] sm:$0xff]  }
 0x4ca   :  { %4507 = vmatpush3.bf16.msra.mxu0 %v4922_v22  ;;  %v4965_v22 = vld [vmem:[#allocation2 + $0x2b8] sm:$0xff]   ;;  %v5005_v43 = vld [vmem:[#allocation2 + $0x328] sm:$0xff]   ;;  %v5009_v36 = vld [vmem:[#allocation2 + $0x320] sm:$0xff]  }
 0x4cb   :  { %4529 = vmatpush3.bf16.msra.mxu1 %v4923_v28  ;;  %4508 = vmatprep.subr.bf16.mxu0 %v4924_v54  ;;  %v2416_v48 = vpack.c.bf16 %v2358_v3, %v2358_v3  ;;  %v4967_v28 = vld [vmem:[#allocation2 + $0x2f0] sm:$0xff]   ;;  %v5011_v38 = vld [vmem:[#allocation2 + $0x358] sm:$0xff]  }
 0x4cc   :  { %4530 = vmatprep.subr.bf16.mxu1 %v4925_v51  ;;  %v4968_v54 = vld [vmem:[#allocation2 + $0x230] sm:$0xff]   ;;  %v4970_v51 = vld [vmem:[#allocation2 + $0x268] sm:$0xff]  }
 0x4cd   :  { %v5015_v3 = vld [vmem:[#allocation2 + $0x350] sm:$0xff]  }
 0x4ce   :  { %4509 = vmatpush3.bf16.msra.mxu0 %v4926_v52  ;;  %v4969_v52 = vld [vmem:[#allocation2 + $0x2b0] sm:$0xff]  }
 0x4cf   :  { %4531 = vmatpush3.bf16.msra.mxu1 %v4927_v55  ;;  %4538 = vmatprep.subr.bf16.mxu0 %v4929_v53  ;;  %v4971_v55 = vld [vmem:[#allocation2 + $0x2e8] sm:$0xff]   ;;  %v4975_v53 = vld [vmem:[#allocation2 + $0x2e0] sm:$0xff]  }
 0x4d0   :  { %4560 = vmatprep.subr.bf16.mxu1 %v4930_v60  ;;  %v4976_v60 = vld [vmem:[#allocation2 + $0x220] sm:$0xff]  }
 0x4d1   :  { %3489 = vmatmul.mubr.bf16.vlgmr.msra.gmra.mxu0 %v2409_v63  ;;  %v4979_v63 = vld [vmem:[#allocation2 + $0x2d8] sm:$0xff]  }
 0x4d2   :  { %4539 = vmatpush3.bf16.msra.mxu0 %v4931_v2  ;;  %3529 = vmatmul.mubr.bf16.vlgmr.msra.gmra.mxu1 %v2411_v7  ;;  %v4981_v2 = vld [vmem:[#allocation2 + $0x298] sm:$0xff]   ;;  %v4983_v7 = vld [vmem:[#allocation2 + $0x2d0] sm:$0xff]  }
 0x4d3   :  { %4540 = vmatprep.subr.bf16.mxu0 %v4933_v8  ;;  %4561 = vmatpush3.bf16.msra.mxu1 %v4932_v49  ;;  %v4984_v8 = vld [vmem:[#allocation2 + $0x210] sm:$0xff]  }
 0x4d4   :  { %4562 = vmatprep.subr.bf16.mxu1 %v4934_v37  ;;  %3568 = vmatprep.mubr.bf16.mxu0 %v2414_v41  ;;  %v4985_v49 = vld [vmem:[#allocation2 + $0x290] sm:$0xff]   ;;  %v4987_v37 = vld [vmem:[#allocation2 + $0x2c8] sm:$0xff]   ;;  %v5013_v41 = vld [vmem:[#allocation2 + $0x318] sm:$0xff]  }
 0x4d5   :  { %3608 = vmatprep.mubr.bf16.mxu1 %v2416_v48  ;;  %v5019_v48 = vld [vmem:[#allocation2 + $0x348] sm:$0xff]  }
 0x4d6   :  { %4541 = vmatpush3.bf16.msra.mxu0 %v4935_v9  ;;  %v4988_v9 = vld [vmem:[#allocation2 + $0x208] sm:$0xff]  }
 0x4d7   :  { %4542 = vmatprep.subr.bf16.mxu0 %v4937_v57  ;;  %4563 = vmatpush3.bf16.msra.mxu1 %v4936_v4  ;;  %v4990_v57 = vld [vmem:[#allocation2 + $0x240] sm:$0xff]   ;;  %v4989_v4 = vld [vmem:[#allocation2 + $0x288] sm:$0xff]  }
 0x4d8   :  { %4564 = vmatprep.subr.bf16.mxu1 %v4938_v10  ;;  %v4991_v10 = vld [vmem:[#allocation2 + $0x2c0] sm:$0xff]  }
 0x4da   :  { %4543 = vmatpush3.bf16.msra.mxu0 %v4939_v11  ;;  %v2319_v11 = vld [vmem:[#allocation3 + $0x10] sm:$0xff] }
 0x4db   :  { %4544 = vmatprep.subr.bf16.mxu0 %v4941_v12  ;;  %4565 = vmatpush3.bf16.msra.mxu1 %v4940_v13  ;;  %v4992_v12 = vld [vmem:[#allocation2 + $0x200] sm:$0xff]   ;;  %v2366_v13 = vrot.slane %v2319_v11, %v6046_v19 }
 0x4dc   :  { %4566 = vmatprep.subr.bf16.mxu1 %v4942_v6  ;;  %v2359_v6 = vcombine.high %v2319_v11, %v2319_v11 }
 0x4de   :  { %4545 = vmatpush3.bf16.msra.mxu0 %v4943_v50  ;;  %v4995_v50 = vld [vmem:[#allocation2 + $0x378] sm:$0xff]  }
 0x4df   :  { %4546 = vmatprep.subr.bf16.mxu0 %v4945_v14  ;;  %4567 = vmatpush3.bf16.msra.mxu1 %v4944_v16  ;;  %v4993_v14 = vld [vmem:[#allocation2 + $0x280] sm:$0xff]   ;;  %v2374_v16 = vcombine.high %v2366_v13, %v2366_v13 }
 0x4e0   :  { %4568 = vmatprep.subr.bf16.mxu1 %v4946_v17  ;;  %v2373_v17 = vrot.slane %v2359_v6, %v6046_v19 }
 0x4e2   :  { %4547 = vmatpush3.bf16.msra.mxu0 %v4947_v18  ;;  %v2417_v18 = vpack.c.bf16 %v2366_v13, %v2366_v13 }
 0x4e3   :  { %4548 = vmatprep.subr.bf16.mxu0 %v4949_v20  ;;  %4569 = vmatpush3.bf16.msra.mxu1 %v4948_v21  ;;  %v4996_v20 = vld [vmem:[#allocation2 + $0x3f8] sm:$0xff]   ;;  %v2418_v21 = vpack.c.bf16 %v2374_v16, %v2374_v16 }
 0x4e4   :  { %4570 = vmatprep.subr.bf16.mxu1 %v4950_v23  ;;  %v2375_v23 = vcombine.high %v2373_v17, %v2373_v17 }
 0x4e6   :  { %4549 = vmatpush3.bf16.msra.mxu0 %v4951_v0  ;;  %v4997_v0 = vld [vmem:[#allocation2 + $0x338] sm:$0xff]  }
 0x4e7   :  { %4550 = vmatprep.subr.bf16.mxu0 %v4953_v5  ;;  %4571 = vmatpush3.bf16.msra.mxu1 %v4952_v24  ;;  %v2419_v5 = vpack.c.bf16 %v2373_v17, %v2373_v17  ;;  %v4999_v24 = vld [vmem:[#allocation2 + $0x370] sm:$0xff]  }
 0x4e8   :  { %4572 = vmatprep.subr.bf16.mxu1 %v4954_v25  ;;  %v2420_v25 = vpack.c.bf16 %v2375_v23, %v2375_v23 }
 0x4ea   :  { %4551 = vmatpush3.bf16.msra.mxu0 %v4955_v26  ;;  %v4998_v26 = vld [vmem:[#allocation2 + $0x3b8] sm:$0xff]  }
 0x4eb   :  { %4552 = vmatprep.subr.bf16.mxu0 %v4957_v27  ;;  %4573 = vmatpush3.bf16.msra.mxu1 %v4956_v30  ;;  %v5000_v27 = vld [vmem:[#allocation2 + $0x3f0] sm:$0xff]  }
 0x4ec   :  { %4574 = vmatprep.subr.bf16.mxu1 %v4958_v29  ;;  %v5001_v30 = vld [vmem:[#allocation2 + $0x330] sm:$0xff]   ;;  %v5003_v29 = vld [vmem:[#allocation2 + $0x368] sm:$0xff]  }
 0x4ee   :  { %4553 = vmatpush3.bf16.msra.mxu0 %v4959_v33  ;;  %v5004_v33 = vld [vmem:[#allocation2 + $0x3e8] sm:$0xff]  }
 0x4ef   :  { %4582 = vmatprep.subr.bf16.mxu0 %v4962_v31  ;;  %4575 = vmatpush3.bf16.msra.mxu1 %v4960_v35  ;;  %v5006_v31 = vld [vmem:[#allocation2 + $0x3a8] sm:$0xff]   ;;  %v5008_v35 = vld [vmem:[#allocation2 + $0x3e0] sm:$0xff]  }
 0x4f0   :  { %4604 = vmatprep.subr.bf16.mxu1 %v4963_v40  ;;  %v5012_v40 = vld [vmem:[#allocation2 + $0x3d8] sm:$0xff]  }
 0x4f1   :  { %3569 = vmatmul.mubr.bf16.vlgmr.msra.gmra.mxu0 %v2413_v39  ;;  %v5010_v39 = vld [vmem:[#allocation2 + $0x3a0] sm:$0xff]  }
 0x4f2   :  { %4583 = vmatpush3.bf16.msra.mxu0 %v4964_v42  ;;  %3609 = vmatmul.mubr.bf16.vlgmr.msra.gmra.mxu1 %v2415_v46  ;;  %v5014_v42 = vld [vmem:[#allocation2 + $0x398] sm:$0xff]   ;;  %v5016_v46 = vld [vmem:[#allocation2 + $0x3d0] sm:$0xff]  }
 0x4f3   :  { %4584 = vmatprep.subr.bf16.mxu0 %v4966_v47  ;;  %4605 = vmatpush3.bf16.msra.mxu1 %v4965_v22  ;;  %v5017_v47 = vld [vmem:[#allocation2 + $0x310] sm:$0xff]  }
 0x4f4   :  { %4606 = vmatprep.subr.bf16.mxu1 %v4967_v28  ;;  %3648 = vmatprep.mubr.bf16.mxu0 %v2418_v21  ;;  %v5018_v22 = vld [vmem:[#allocation2 + $0x390] sm:$0xff]   ;;  %v5020_v28 = vld [vmem:[#allocation2 + $0x3c8] sm:$0xff]  }
 0x4f5   :  { %3688 = vmatprep.mubr.bf16.mxu1 %v2420_v25 }
 0x4f6   :  { %4585 = vmatpush3.bf16.msra.mxu0 %v4968_v54  ;;  %v5021_v54 = vld [vmem:[#allocation2 + $0x308] sm:$0xff]  }
 0x4f7   :  { %4586 = vmatprep.subr.bf16.mxu0 %v4970_v51  ;;  %4607 = vmatpush3.bf16.msra.mxu1 %v4969_v52  ;;  %v5023_v51 = vld [vmem:[#allocation2 + $0x340] sm:$0xff]   ;;  %v5022_v52 = vld [vmem:[#allocation2 + $0x388] sm:$0xff]  }
 0x4f8   :  { %4608 = vmatprep.subr.bf16.mxu1 %v4971_v55  ;;  %v5024_v55 = vld [vmem:[#allocation2 + $0x3c0] sm:$0xff]  }
 0x4fa   :  { %4587 = vmatpush3.bf16.msra.mxu0 %v4972_v56  ;;  %v5025_v56 = vld [vmem:[#allocation2 + $0x300] sm:$0xff]  }
 0x4fb   :  { %4588 = vmatprep.subr.bf16.mxu0 %v4974_v44  ;;  %4609 = vmatpush3.bf16.msra.mxu1 %v4973_v58  ;;  %v2320_v44 = vld [vmem:[#allocation3 + $0x18] sm:$0xff] }
 0x4fc   :  { %4610 = vmatprep.subr.bf16.mxu1 %v4975_v53  ;;  %v2383_v58 = vrot.slane %v2320_v44, %v6046_v19  ;;  %v2376_v53 = vcombine.high %v2320_v44, %v2320_v44 }
 0x4fe   :  { %4589 = vmatpush3.bf16.msra.mxu0 %v4976_v60  ;;  %v5026_v60 = vld [vmem:[#allocation2 + $0x380] sm:$0xff]  }
 0x4ff   :  { %4590 = vmatprep.subr.bf16.mxu0 %v4978_v61  ;;  %4611 = vmatpush3.bf16.msra.mxu1 %v4977_v62  ;;  %v2391_v61 = vcombine.high %v2383_v58, %v2383_v58  ;;  %v2390_v62 = vrot.slane %v2376_v53, %v6046_v19 }
 0x500   :  { %4612 = vmatprep.subr.bf16.mxu1 %v4979_v63  ;;  %v2421_v63 = vpack.c.bf16 %v2383_v58, %v2383_v58 }
 0x502   :  { %4591 = vmatpush3.bf16.msra.mxu0 %v4980_v1  ;;  %v2422_v1 = vpack.c.bf16 %v2391_v61, %v2391_v61 }
 0x503   :  { %4592 = vmatprep.subr.bf16.mxu0 %v4982_v59  ;;  %4613 = vmatpush3.bf16.msra.mxu1 %v4981_v2  ;;  %v2392_v59 = vcombine.high %v2390_v62, %v2390_v62  ;;  %v2423_v2 = vpack.c.bf16 %v2390_v62, %v2390_v62 }
 0x504   :  { %4614 = vmatprep.subr.bf16.mxu1 %v4983_v7 }
 0x505   :  { %v2424_v7 = vpack.c.bf16 %v2392_v59, %v2392_v59 }
 0x506   :  { %4593 = vmatpush3.bf16.msra.mxu0 %v4984_v8 }
 0x507   :  { %4594 = vmatprep.subr.bf16.mxu0 %v4986_v45  ;;  %4615 = vmatpush3.bf16.msra.mxu1 %v4985_v49  ;;  %v4170_v49 = vld [vmem:[%s6173_s6] ss:$0 sm:$0xff]  ;;  %s5055_s6 = smov [#allocation5]  }
 0x508   :  { %4616 = vmatprep.subr.bf16.mxu1 %v4987_v37  ;;  %s3809_s15 = sshll.u32 %s5055_s6, 4  ;;  %s3810_s15 = int_to_ptr.vmem [resolvable:$true] %s3809_s15 }
 0x509   :  { %s5028_s16 = scalar_lea.vmem %s3810_s15, 32  ;;  %p5033_p1 = scmp.lt.s32.totalorder %s3810_s15, %s3810_s15 }
 0x50a   :  { %4595 = vmatpush3.bf16.msra.mxu0 %v4988_v9  ;;  %p5029_p0 = scmp.ne.s32.totalorder %s3810_s15, %s5028_s16  ;;  %p5034_p2 = scmp.lt.s32.totalorder %s5028_s16, %s5028_s16 }
 0x50b   :  { %4596 = vmatprep.subr.bf16.mxu0 %v4990_v57  ;;  %4617 = vmatpush3.bf16.msra.mxu1 %v4989_v4 }
 0x50c   :  { %4618 = vmatprep.subr.bf16.mxu1 %v4991_v10  ;;  %p5035_p3 = por %p5034_p2, %p5033_p1 }
 0x50e   :  { %4597 = vmatpush3.bf16.msra.mxu0 %v4992_v12  ;;  %p5036_p4 = pnand %p5035_p3, %p5029_p0 }
 0x50f   :  { %4626 = vmatprep.subr.bf16.mxu0 %v4995_v50  ;;  %4619 = vmatpush3.bf16.msra.mxu1 %v4993_v14 }
 0x510   :  { %4648 = vmatprep.subr.bf16.mxu1 %v4996_v20 }
 0x511   :  { %3649 = vmatmul.mubr.bf16.vlgmr.msra.gmra.mxu0 %v2417_v18 }
 0x512   :  { %4627 = vmatpush3.bf16.msra.mxu0 %v4997_v0  ;;  %3689 = vmatmul.mubr.bf16.vlgmr.msra.gmra.mxu1 %v2419_v5 }
 0x513   :  { %4628 = vmatprep.subr.bf16.mxu0 %v4999_v24  ;;  %4649 = vmatpush3.bf16.msra.mxu1 %v4998_v26 }
 0x514   :  { %4650 = vmatprep.subr.bf16.mxu1 %v5000_v27  ;;  %3728 = vmatprep.mubr.bf16.mxu0 %v2422_v1 }
 0x515   :  { %3768 = vmatprep.mubr.bf16.mxu1 %v2424_v7 }
 0x516   :  { %4629 = vmatpush3.bf16.msra.mxu0 %v5001_v30 }
 0x517   :  { %4630 = vmatprep.subr.bf16.mxu0 %v5003_v29  ;;  %4651 = vmatpush3.bf16.msra.mxu1 %v5002_v32 }
 0x518   :  { %4652 = vmatprep.subr.bf16.mxu1 %v5004_v33 }
 0x51a   :  { %4631 = vmatpush3.bf16.msra.mxu0 %v5005_v43 }
 0x51b   :  { %4632 = vmatprep.subr.bf16.mxu0 %v5007_v34  ;;  %4653 = vmatpush3.bf16.msra.mxu1 %v5006_v31 }
 0x51c   :  { %4654 = vmatprep.subr.bf16.mxu1 %v5008_v35  ;;  %v5054_v35 = vmov 1966171168  }
 0x51e   :  { %4633 = vmatpush3.bf16.msra.mxu0 %v5009_v36  ;;  %v3778_v36 = vunpack.c.l.s4 %v5054_v35 }
 0x51f   :  { %4634 = vmatprep.subr.bf16.mxu0 %v5011_v38  ;;  %4655 = vmatpush3.bf16.msra.mxu1 %v5010_v39 }
 0x520   :  { %4656 = vmatprep.subr.bf16.mxu1 %v5012_v40 }
 0x522   :  { %4635 = vmatpush3.bf16.msra.mxu0 %v5013_v41  ;;  %v3779_v41 = vunpack.c.0.s8 %v3778_v36 }
 0x523   :  { %4636 = vmatprep.subr.bf16.mxu0 %v5015_v3  ;;  %4657 = vmatpush3.bf16.msra.mxu1 %v5014_v42 }
 0x524   :  { %4658 = vmatprep.subr.bf16.mxu1 %v5016_v46 }
 0x526   :  { %4637 = vmatpush3.bf16.msra.mxu0 %v5017_v47 }
 0x527   :  { %4638 = vmatprep.subr.bf16.mxu0 %v5019_v48  ;;  %4659 = vmatpush3.bf16.msra.mxu1 %v5018_v22 }
 0x528   :  { %4660 = vmatprep.subr.bf16.mxu1 %v5020_v28 }
 0x52a   :  { %4639 = vmatpush3.bf16.msra.mxu0 %v5021_v54 }
 0x52b   :  { %4640 = vmatprep.subr.bf16.mxu0 %v5023_v51  ;;  %4661 = vmatpush3.bf16.msra.mxu1 %v5022_v52  ;;  %v3782_v51 = vsub.s32 %v3779_v41, %v5674_v15 }
 0x52c   :  { %4662 = vmatprep.subr.bf16.mxu1 %v5024_v55 }
 0x52e   :  { %4641 = vmatpush3.bf16.msra.mxu0 %v5025_v56 }
 0x52f   :  { %4663 = vmatpush3.bf16.msra.mxu1 %v5026_v60 }
 0x531   :  { %3729 = vmatmul.mubr.bf16.vlgmr.msra.gmra.mxu0 %v2421_v63 }
 0x532   :  { %3769 = vmatmul.mubr.bf16.vlgmr.msra.gmra.mxu1 %v2423_v2 }
 0x591   :  { %v4510_v8 = vpop.f32.mrf.mxu0 }
 0x592   :  { %v4532_v45 = vpop.f32.mrf.mxu1 }
 0x593   :  { %v4511_v37 = vpop.f32.mrf.mxu0 }
 0x594   :  { %v4512_v9 = vadd.f32 %v4511_v37, %v4510_v8  ;;  %v4533_v19 = vpop.f32.mrf.mxu1 }
 0x595   :  { %v4513_v57 = vpop.f32.mrf.mxu0  ;;  %v4534_v10 = vadd.f32 %v4533_v19, %v4532_v45 }
 0x596   :  { %v3491_v4 = vadd.f32 %v4512_v9, %v4170_v49  ;;  %v4535_v11 = vpop.f32.mrf.mxu1 }
 0x597   :  { %v4514_v12 = vpop.f32.mrf.mxu0 }
 0x598   :  { %v3531_v13 = vadd.f32 %v4534_v10, %v3491_v4  ;;  %v4536_v6 = vpop.f32.mrf.mxu1 }
 0x5b1   :  { %v4554_v50 = vpop.f32.mrf.mxu0 }
 0x5b2   :  { %v4576_v14 = vpop.f32.mrf.mxu1 }
 0x5b3   :  { %v4555_v16 = vpop.f32.mrf.mxu0 }
 0x5b4   :  { %v4577_v17 = vpop.f32.mrf.mxu1  ;;  %v4556_v32 = vadd.f32 %v4555_v16, %v4554_v50 }
 0x5b5   :  { %v4557_v18 = vpop.f32.mrf.mxu0  ;;  %v4578_v43 = vadd.f32 %v4577_v17, %v4576_v14 }
 0x5b6   :  { %v4579_v20 = vpop.f32.mrf.mxu1  ;;  %v3571_v33 = vadd.f32 %v4556_v32, %v3531_v13 }
 0x5b7   :  { %v4558_v21 = vpop.f32.mrf.mxu0 }
 0x5b8   :  { %v4580_v23 = vpop.f32.mrf.mxu1  ;;  %v3611_v31 = vadd.f32 %v4578_v43, %v3571_v33 }
 0x5d1   :  { %v4598_v0 = vpop.f32.mrf.mxu0 }
 0x5d2   :  { %v4620_v5 = vpop.f32.mrf.mxu1 }
 0x5d3   :  { %v4599_v24 = vpop.f32.mrf.mxu0 }
 0x5d4   :  { %v4621_v25 = vpop.f32.mrf.mxu1  ;;  %v4600_v34 = vadd.f32 %v4599_v24, %v4598_v0 }
 0x5d5   :  { %v4601_v26 = vpop.f32.mrf.mxu0  ;;  %v4622_v39 = vadd.f32 %v4621_v25, %v4620_v5 }
 0x5d6   :  { %v4623_v27 = vpop.f32.mrf.mxu1  ;;  %v3651_v38 = vadd.f32 %v4600_v34, %v3611_v31 }
 0x5d7   :  { %v4602_v30 = vpop.f32.mrf.mxu0 }
 0x5d8   :  { %v4624_v29 = vpop.f32.mrf.mxu1  ;;  %v3691_v46 = vadd.f32 %v4622_v39, %v3651_v38 }
 0x5f1   :  { %v4642_v40 = vpop.f32.mrf.mxu0 }
 0x5f2   :  { %v4664_v3 = vpop.f32.mrf.mxu1 }
 0x5f3   :  { %v4643_v42 = vpop.f32.mrf.mxu0 }
 0x5f4   :  { %v4644_v47 = vadd.f32 %v4643_v42, %v4642_v40  ;;  %v4665_v48 = vpop.f32.mrf.mxu1 }
 0x5f5   :  { %v4645_v22 = vpop.f32.mrf.mxu0  ;;  %v4666_v54 = vadd.f32 %v4665_v48, %v4664_v3 }
 0x5f6   :  { %v3731_v28 = vadd.f32 %v4644_v47, %v3691_v46  ;;  %v4667_v52 = vpop.f32.mrf.mxu1 }
 0x5f7   :  { %v4646_v55 = vpop.f32.mrf.mxu0 }
 0x5f8   :  { %v3771_v56 = vadd.f32 %v4666_v54, %v3731_v28  ;;  %v4668_v44 = vpop.f32.mrf.mxu1 }
 0x5fa   :  { %v3783_v58 = vrot.slane %v3771_v56, %v3782_v51 }
 0x5fc   :  { %v3784_v53 = vcombine.high %v3783_v58, %v3783_v58  ;;  %v3791_v60 = vrot.slane %v3783_v58, %v3782_v51 }
 0x5fe   :  { %v3798_v61 = vrot.slane %v3784_v53, %v3782_v51  ;;  %3802 = vst.msk [vmem:[#allocation5] sm:$0x1] %vm3801_vm15, %v3791_v60 }
 0x600   :  { %3803 = vst.msk [vmem:[#allocation5 + $0x1] sm:$0x1] %vm3801_vm15, %v3798_v61 }
 0x601   :  { %5039 = shalt.err (!%p5036_p4)
}
 0x602   :  { %s5056_s1 = smov 16   ;;  %s5057_s17 = smov 1  }
 0x603   :  { %3815 = dma.vmem_to_hbm [thread:$0]  %s3810_s15, 32, %s6174_s7, [#allocation6], %s5056_s1, %s5056_s1, %s5057_s17  }
 0x604   :  { %5050 = dma.done.wait [#allocation6], 32  }
 0x605   :  { %5051 = vsyncadd [#allocation6], 4294967264 }
 0x606   :  { %3819 = vsyncpa [#allocation6], 1 }
 0x607   :  { %3820 = vsyncmov [#allocation4] }
 0x60a   :  { %s3821_s20 = vpop.sfrf %3820 }
 0x60b   :  { %p4299_p5 = scmp.ne.s32.totalorder %s3821_s20, 0 }
 0x60d   :  { %3825 = shalt.err (%p4299_p5)  }

</bundles_post_ra>
